<compile_context>
chip_gen: v7x
topology: tpu7x:2x2x1
jax: 0.10.0
libtpu: 0.0.40
codegen_flags: <defaults>
</compile_context>

<pallas_src>
import functools
import math

import jax
import jax.numpy as jnp
import numpy as np
from jax.experimental import pallas as pl
from jax.experimental.pallas import tpu as pltpu


# --------------------------------------------------------------------------
# Pallas kernel: one batch element per grid step, (C, H*W) lane-dense tile.
# --------------------------------------------------------------------------
def _linear_attention_kernel(x_ref, wqkv_ref, bqkv_ref, wout_ref, bout_ref,
                             ind_lh_ref, ind_hl_ref, o_ref, *, n_heads, width):
    C = x_ref.shape[1]
    L = x_ref.shape[2]                        # H * W  (lane axis)
    f = C // n_heads
    scale_over_w = (1.0 / math.sqrt(f)) / width

    x = x_ref[0]                              # (C, L), lane-dense

    # InstanceNorm2d: biased variance over the spatial (lane) axis, eps=1e-5.
    mean = jnp.mean(x, axis=-1, keepdims=True)
    xc = x - mean
    var = jnp.mean(xc * xc, axis=-1, keepdims=True)
    xn = xc * jax.lax.rsqrt(var + 1e-5)

    # Fused 1x1 conv: (3C, C) @ (C, L) on the MXU, + bias column.
    qkv = jnp.dot(wqkv_ref[...], xn, preferred_element_type=jnp.float32)
    qkv = qkv + bqkv_ref[...]

    # Sublane-aligned row split (multiples of 8) + major-dim-only reshapes.
    q = qkv[:C].reshape(n_heads, f, L)
    k = qkv[C:2 * C]                          # (C, L)
    v = qkv[2 * C:].reshape(n_heads, f, L)

    # q softmax over the per-head feature axis; scale and 1/W are folded into
    # the (n, 1, L) normalizer instead of any full-tile multiply.
    qmax = jnp.max(q, axis=1, keepdims=True)
    qe = jnp.exp(q - qmax)
    q_inv = pl.reciprocal(jnp.sum(qe, axis=1, keepdims=True), approx=True)
    qsm = qe * (q_inv * scale_over_w)                         # (n, f, L)

    # k softmax over W within each spatial row, lane-native.  Shift by the
    # per-channel max over all L lanes (softmax is shift invariant; exp only
    # underflows for a >80 dynamic range inside one channel, implausible
    # after InstanceNorm).  Per-row sums via two tiny indicator matmuls.
    # TODO(synk): switch to a per-row max shift if reused with weight scales
    # far larger than Conv2d's default init.
    kmax = jnp.max(k, axis=-1, keepdims=True)
    ke = jnp.exp(k - kmax)                                    # (C, L)
    krow = jnp.dot(ke, ind_lh_ref[...],
                   preferred_element_type=jnp.float32)        # (C, H)
    ksum = jnp.dot(krow, ind_hl_ref[...],
                   preferred_element_type=jnp.float32)        # (C, L)
    ksm = (ke * pl.reciprocal(ksum, approx=True)).reshape(n_heads, f, L)

    # Context-first linear attention (reference associativity, no (L,L) P):
    #   context[n, k, v, r] = sum_{l in row r} ksm[n, k, l] * v[n, v, l]
    #   out[n, v, l]        = sum_k context[n, k, v, row(l)] * qsm[n, k, l]
    kv = ksm[:, :, None, :] * v[:, None, :, :]                # (n, f, f, L)
    ctx = jnp.dot(kv.reshape(n_heads * f * f, L), ind_lh_ref[...],
                  preferred_element_type=jnp.float32)         # (n*f*f, H)
    ctx_lane = jnp.dot(ctx, ind_hl_ref[...],
                       preferred_element_type=jnp.float32)    # (n*f*f, L)
    ctx_lane = ctx_lane.reshape(n_heads, f, f, L)
    attn = jnp.sum(ctx_lane * qsm[:, :, None, :], axis=1)     # (n, f, L)
    attn = attn.reshape(C, L)

    # Output 1x1 conv + residual with the pre-norm input; lane-dense store.
    out = jnp.dot(wout_ref[...], attn, preferred_element_type=jnp.float32)
    o_ref[0] = (out + bout_ref[...] + x).astype(o_ref.dtype)


def linear_attention_pallas(x_nchw, w_qkv, b_qkv, w_out, b_out, n_heads):
    B, C, H, W = x_nchw.shape
    L = H * W
    x2 = x_nchw.reshape(B, C, L)              # free view change, no transpose
    bq = b_qkv.reshape(3 * C, 1)
    bo = b_out.reshape(C, 1)

    # Hoisted row-structure constants (built once on host, resident in VMEM
    # via a constant index_map): ind_LH[l, r] = 1 iff lane l lies in row r.
    rows = np.arange(L) // W
    ind_lh_np = (rows[:, None] == np.arange(H)[None, :]).astype(np.float32)
    ind_lh = jnp.asarray(ind_lh_np)           # (L, H)
    ind_hl = jnp.asarray(ind_lh_np.T)         # (H, L)

    kernel = functools.partial(_linear_attention_kernel,
                               n_heads=n_heads, width=W)
    out = pl.pallas_call(
        kernel,
        out_shape=jax.ShapeDtypeStruct((B, C, L), x_nchw.dtype),
        grid=(B,),
        in_specs=[
            pl.BlockSpec((1, C, L), lambda b: (b, 0, 0)),
            pl.BlockSpec((3 * C, C), lambda b: (0, 0)),
            pl.BlockSpec((3 * C, 1), lambda b: (0, 0)),
            pl.BlockSpec((C, C), lambda b: (0, 0)),
            pl.BlockSpec((C, 1), lambda b: (0, 0)),
            pl.BlockSpec((L, H), lambda b: (0, 0)),
            pl.BlockSpec((H, L), lambda b: (0, 0)),
        ],
        out_specs=pl.BlockSpec((1, C, L), lambda b: (b, 0, 0)),
        compiler_params=pltpu.CompilerParams(
            dimension_semantics=("parallel",),            # megacore over batch
            vmem_limit_bytes=32 * 1024 * 1024,            # fits v7x's 64 MiB too
        ),
    )(x2, w_qkv, bq, w_out, bo, ind_lh, ind_hl)
    return out.reshape(B, C, H, W)


# --------------------------------------------------------------------------
# Pure-JAX reference mirroring the PyTorch module exactly (NCHW).
# --------------------------------------------------------------------------
def linear_attention_reference(x, w_qkv, b_qkv, w_out, b_out, n_heads):
    B, C, H, W = x.shape
    f = C // n_heads
    scale = 1.0 / np.sqrt(f)

    mean = x.mean(axis=(2, 3), keepdims=True)
    var = ((x - mean) ** 2).mean(axis=(2, 3), keepdims=True)
    xn = (x - mean) / jnp.sqrt(var + 1e-5)

    qkv = jnp.einsum('bchw,oc->bohw', xn, w_qkv) + b_qkv[None, :, None, None]
    q, k, v = jnp.split(qkv, 3, axis=1)

    def rearr(t):  # 'b (h f) c t -> (b c) h f t'
        t = t.reshape(B, n_heads, f, H, W)
        t = jnp.transpose(t, (0, 3, 1, 2, 4))
        return t.reshape(B * H, n_heads, f, W)

    q, k, v = rearr(q), rearr(k), rearr(v)
    q = jax.nn.softmax(q, axis=-2) * scale
    k = jax.nn.softmax(k, axis=-1)
    v = v / W

    context = jnp.einsum('bhkl,bhvl->bhkv', k, v)
    out = jnp.einsum('bhdv,bhdl->bhvl', context, q)

    out = out.reshape(B, H, n_heads, f, W)                # '(b c) h f t -> b (h f) c t'
    out = jnp.transpose(out, (0, 2, 3, 1, 4)).reshape(B, C, H, W)
    out = jnp.einsum('bchw,oc->bohw', out, w_out) + b_out[None, :, None, None]
    return out + x


if __name__ == "__main__":
    B, C, H, W = 2, 32, 8, 16
    n_heads = 4

    key = jax.random.PRNGKey(0)
    k1, k2, k3, k4, k5 = jax.random.split(key, 5)
    x = jax.random.normal(k1, (B, C, H, W), dtype=jnp.float32)

    # Deterministic synthetic Conv2d(kernel_size=1) parameters.
    bound = 1.0 / np.sqrt(C)
    w_qkv = jax.random.uniform(k2, (3 * C, C), jnp.float32, -bound, bound)
    b_qkv = jax.random.uniform(k3, (3 * C,), jnp.float32, -bound, bound)
    w_out = jax.random.uniform(k4, (C, C), jnp.float32, -bound, bound)
    b_out = jax.random.uniform(k5, (C,), jnp.float32, -bound, bound)

    out = linear_attention_pallas(x, w_qkv, b_qkv, w_out, b_out, n_heads)
    out = jax.block_until_ready(out)

    ref = linear_attention_reference(x, w_qkv, b_qkv, w_out, b_out, n_heads)
    assert out.shape == (B, C, H, W)
    if not np.allclose(np.asarray(out), np.asarray(ref), atol=2e-3, rtol=2e-3):
        raise AssertionError("Pallas kernel does not match reference")

    print("KERNEL_OK")
</pallas_src>

<mosaic_0001>
module attributes {stable_mosaic.version = 11 : i64} {
  func.func @_linear_attention_kernel(%arg0: i32, %arg1: memref<1x32x128xf32, #tpu.memory_space<vmem>>, %arg2: memref<96x32xf32, #tpu.memory_space<vmem>>, %arg3: memref<96x1xf32, #tpu.memory_space<vmem>>, %arg4: memref<32x32xf32, #tpu.memory_space<vmem>>, %arg5: memref<32x1xf32, #tpu.memory_space<vmem>>, %arg6: memref<128x8xf32, #tpu.memory_space<vmem>>, %arg7: memref<8x128xf32, #tpu.memory_space<vmem>>, %arg8: memref<1x32x128xf32, #tpu.memory_space<vmem>>) attributes {dimension_semantics = [#tpu.dimension_semantics<parallel>], iteration_bounds = array<i64: 2>, scalar_prefetch = 0 : i64, scratch_operands = 0 : i64, tpu.core_type = #tpu.core_type<tc>, window_params = [{transform_indices = @transform_0, window_bounds = array<i64: 1, 32, 128>}, {pipeline_mode = #tpu.pipeline_mode<synchronous>, transform_indices = @transform_1, window_bounds = array<i64: 96, 32>}, {pipeline_mode = #tpu.pipeline_mode<synchronous>, transform_indices = @transform_2, window_bounds = array<i64: 96, 1>}, {pipeline_mode = #tpu.pipeline_mode<synchronous>, transform_indices = @transform_3, window_bounds = array<i64: 32, 32>}, {pipeline_mode = #tpu.pipeline_mode<synchronous>, transform_indices = @transform_4, window_bounds = array<i64: 32, 1>}, {pipeline_mode = #tpu.pipeline_mode<synchronous>, transform_indices = @transform_5, window_bounds = array<i64: 128, 8>}, {pipeline_mode = #tpu.pipeline_mode<synchronous>, transform_indices = @transform_6, window_bounds = array<i64: 8, 128>}, {transform_indices = @transform_7, window_bounds = array<i64: 1, 32, 128>}]} {
    %c0 = arith.constant 0 : index
    %c0_0 = arith.constant 0 : index
    %c0_1 = arith.constant 0 : index
    %0 = vector.load %arg1[%c0, %c0_0, %c0_1] : memref<1x32x128xf32, #tpu.memory_space<vmem>>, vector<1x32x128xf32>
    %1 = vector.shape_cast %0 : vector<1x32x128xf32> to vector<32x128xf32>
    %cst = arith.constant dense<0.000000e+00> : vector<32xf32>
    %2 = vector.multi_reduction <add>, %1, %cst [1] : vector<32x128xf32> to vector<32xf32>
    %3 = vector.shape_cast %2 : vector<32xf32> to vector<32x1xf32>
    %cst_2 = arith.constant 1.280000e+02 : f32
    %4 = vector.broadcast %cst_2 : f32 to vector<32x1xf32>
    %5 = arith.divf %3, %4 : vector<32x1xf32>
    %6 = vector.broadcast %5 : vector<32x1xf32> to vector<32x128xf32>
    %7 = arith.subf %1, %6 : vector<32x128xf32>
    %8 = arith.mulf %7, %7 : vector<32x128xf32>
    %cst_3 = arith.constant dense<0.000000e+00> : vector<32xf32>
    %9 = vector.multi_reduction <add>, %8, %cst_3 [1] : vector<32x128xf32> to vector<32xf32>
    %10 = vector.shape_cast %9 : vector<32xf32> to vector<32x1xf32>
    %cst_4 = arith.constant 1.280000e+02 : f32
    %11 = vector.broadcast %cst_4 : f32 to vector<32x1xf32>
    %12 = arith.divf %10, %11 : vector<32x1xf32>
    %cst_5 = arith.constant 9.99999974E-6 : f32
    %13 = vector.broadcast %cst_5 : f32 to vector<32x1xf32>
    %14 = arith.addf %12, %13 : vector<32x1xf32>
    %15 = math.rsqrt %14 : vector<32x1xf32>
    %16 = vector.broadcast %15 : vector<32x1xf32> to vector<32x128xf32>
    %17 = arith.mulf %7, %16 : vector<32x128xf32>
    %c0_6 = arith.constant 0 : index
    %c0_7 = arith.constant 0 : index
    %18 = vector.load %arg2[%c0_6, %c0_7] : memref<96x32xf32, #tpu.memory_space<vmem>>, vector<96x32xf32>
    %cst_8 = arith.constant dense<0.000000e+00> : vector<96x128xf32>
    %19 = tpu.matmul %18, %17, %cst_8 {dimension_numbers = #tpu.dot_dimension_numbers<[1], [0], [0], [1], [0, 0, 1, 1], [], []>} : vector<96x32xf32>, vector<32x128xf32>, vector<96x128xf32> -> vector<96x128xf32>
    %c0_9 = arith.constant 0 : index
    %c0_10 = arith.constant 0 : index
    %20 = vector.load %arg3[%c0_9, %c0_10] : memref<96x1xf32, #tpu.memory_space<vmem>>, vector<96x1xf32>
    %21 = vector.broadcast %20 : vector<96x1xf32> to vector<96x128xf32>
    %22 = arith.addf %19, %21 : vector<96x128xf32>
    %23 = vector.extract_strided_slice %22 {offsets = [0, 0], sizes = [32, 128], strides = [1, 1]} : vector<96x128xf32> to vector<32x128xf32>
    %24 = vector.shape_cast %23 : vector<32x128xf32> to vector<4x8x128xf32>
    %25 = vector.extract_strided_slice %22 {offsets = [32, 0], sizes = [32, 128], strides = [1, 1]} : vector<96x128xf32> to vector<32x128xf32>
    %26 = vector.extract_strided_slice %22 {offsets = [64, 0], sizes = [32, 128], strides = [1, 1]} : vector<96x128xf32> to vector<32x128xf32>
    %27 = vector.shape_cast %26 : vector<32x128xf32> to vector<4x8x128xf32>
    %cst_11 = arith.constant dense<0xFF800000> : vector<4x128xf32>
    %28 = vector.multi_reduction <maximumf>, %24, %cst_11 [1] : vector<4x8x128xf32> to vector<4x128xf32>
    %29 = vector.shape_cast %28 : vector<4x128xf32> to vector<4x1x128xf32>
    %30 = vector.broadcast %29 : vector<4x1x128xf32> to vector<4x8x128xf32>
    %31 = arith.subf %24, %30 : vector<4x8x128xf32>
    %32 = math.exp %31 : vector<4x8x128xf32>
    %cst_12 = arith.constant dense<0.000000e+00> : vector<4x128xf32>
    %33 = vector.multi_reduction <add>, %32, %cst_12 [1] : vector<4x8x128xf32> to vector<4x128xf32>
    %34 = vector.shape_cast %33 : vector<4x128xf32> to vector<4x1x128xf32>
    %35 = tpu.reciprocal %34 {approx = true} : vector<4x1x128xf32> -> vector<4x1x128xf32>
    %cst_13 = arith.constant 0.0220970865 : f32
    %36 = vector.broadcast %cst_13 : f32 to vector<4x1x128xf32>
    %37 = arith.mulf %35, %36 : vector<4x1x128xf32>
    %38 = vector.broadcast %37 : vector<4x1x128xf32> to vector<4x8x128xf32>
    %39 = arith.mulf %32, %38 : vector<4x8x128xf32>
    %cst_14 = arith.constant dense<0xFF800000> : vector<32xf32>
    %40 = vector.multi_reduction <maximumf>, %25, %cst_14 [1] : vector<32x128xf32> to vector<32xf32>
    %41 = vector.shape_cast %40 : vector<32xf32> to vector<32x1xf32>
    %42 = vector.broadcast %41 : vector<32x1xf32> to vector<32x128xf32>
    %43 = arith.subf %25, %42 : vector<32x128xf32>
    %44 = math.exp %43 : vector<32x128xf32>
    %c0_15 = arith.constant 0 : index
    %c0_16 = arith.constant 0 : index
    %45 = vector.load %arg6[%c0_15, %c0_16] : memref<128x8xf32, #tpu.memory_space<vmem>>, vector<128x8xf32>
    %cst_17 = arith.constant dense<0.000000e+00> : vector<32x8xf32>
    %46 = tpu.matmul %44, %45, %cst_17 {dimension_numbers = #tpu.dot_dimension_numbers<[1], [0], [0], [1], [0, 0, 1, 1], [], []>} : vector<32x128xf32>, vector<128x8xf32>, vector<32x8xf32> -> vector<32x8xf32>
    %c0_18 = arith.constant 0 : index
    %c0_19 = arith.constant 0 : index
    %47 = vector.load %arg7[%c0_18, %c0_19] : memref<8x128xf32, #tpu.memory_space<vmem>>, vector<8x128xf32>
    %cst_20 = arith.constant dense<0.000000e+00> : vector<32x128xf32>
    %48 = tpu.matmul %46, %47, %cst_20 {dimension_numbers = #tpu.dot_dimension_numbers<[1], [0], [0], [1], [0, 0, 1, 1], [], []>} : vector<32x8xf32>, vector<8x128xf32>, vector<32x128xf32> -> vector<32x128xf32>
    %49 = tpu.reciprocal %48 {approx = true} : vector<32x128xf32> -> vector<32x128xf32>
    %50 = arith.mulf %44, %49 : vector<32x128xf32>
    %51 = vector.shape_cast %50 : vector<32x128xf32> to vector<4x8x128xf32>
    %52 = vector.shape_cast %51 : vector<4x8x128xf32> to vector<4x8x1x128xf32>
    %53 = vector.shape_cast %27 : vector<4x8x128xf32> to vector<4x1x8x128xf32>
    %54 = vector.broadcast %52 : vector<4x8x1x128xf32> to vector<4x8x8x128xf32>
    %55 = vector.broadcast %53 : vector<4x1x8x128xf32> to vector<4x8x8x128xf32>
    %56 = arith.mulf %54, %55 : vector<4x8x8x128xf32>
    %57 = vector.shape_cast %56 : vector<4x8x8x128xf32> to vector<256x128xf32>
    %c0_21 = arith.constant 0 : index
    %c0_22 = arith.constant 0 : index
    %58 = vector.load %arg6[%c0_21, %c0_22] : memref<128x8xf32, #tpu.memory_space<vmem>>, vector<128x8xf32>
    %cst_23 = arith.constant dense<0.000000e+00> : vector<256x8xf32>
    %59 = tpu.matmul %57, %58, %cst_23 {dimension_numbers = #tpu.dot_dimension_numbers<[1], [0], [0], [1], [0, 0, 1, 1], [], []>} : vector<256x128xf32>, vector<128x8xf32>, vector<256x8xf32> -> vector<256x8xf32>
    %c0_24 = arith.constant 0 : index
    %c0_25 = arith.constant 0 : index
    %60 = vector.load %arg7[%c0_24, %c0_25] : memref<8x128xf32, #tpu.memory_space<vmem>>, vector<8x128xf32>
    %cst_26 = arith.constant dense<0.000000e+00> : vector<256x128xf32>
    %61 = tpu.matmul %59, %60, %cst_26 {dimension_numbers = #tpu.dot_dimension_numbers<[1], [0], [0], [1], [0, 0, 1, 1], [], []>} : vector<256x8xf32>, vector<8x128xf32>, vector<256x128xf32> -> vector<256x128xf32>
    %62 = vector.shape_cast %61 : vector<256x128xf32> to vector<4x8x8x128xf32>
    %63 = vector.shape_cast %39 : vector<4x8x128xf32> to vector<4x8x1x128xf32>
    %64 = vector.broadcast %63 : vector<4x8x1x128xf32> to vector<4x8x8x128xf32>
    %65 = arith.mulf %62, %64 : vector<4x8x8x128xf32>
    %cst_27 = arith.constant dense<0.000000e+00> : vector<4x8x128xf32>
    %66 = vector.multi_reduction <add>, %65, %cst_27 [1] : vector<4x8x8x128xf32> to vector<4x8x128xf32>
    %67 = vector.shape_cast %66 : vector<4x8x128xf32> to vector<32x128xf32>
    %c0_28 = arith.constant 0 : index
    %c0_29 = arith.constant 0 : index
    %68 = vector.load %arg4[%c0_28, %c0_29] : memref<32x32xf32, #tpu.memory_space<vmem>>, vector<32x32xf32>
    %cst_30 = arith.constant dense<0.000000e+00> : vector<32x128xf32>
    %69 = tpu.matmul %68, %67, %cst_30 {dimension_numbers = #tpu.dot_dimension_numbers<[1], [0], [0], [1], [0, 0, 1, 1], [], []>} : vector<32x32xf32>, vector<32x128xf32>, vector<32x128xf32> -> vector<32x128xf32>
    %c0_31 = arith.constant 0 : index
    %c0_32 = arith.constant 0 : index
    %70 = vector.load %arg5[%c0_31, %c0_32] : memref<32x1xf32, #tpu.memory_space<vmem>>, vector<32x1xf32>
    %71 = vector.broadcast %70 : vector<32x1xf32> to vector<32x128xf32>
    %72 = arith.addf %69, %71 : vector<32x128xf32>
    %73 = arith.addf %72, %1 : vector<32x128xf32>
    %c0_33 = arith.constant 0 : index
    %c0_34 = arith.constant 0 : index
    %c0_35 = arith.constant 0 : index
    %74 = vector.load %arg8[%c0_33, %c0_34, %c0_35] : memref<1x32x128xf32, #tpu.memory_space<vmem>>, vector<1x32x128xf32>
    %75 = vector.shape_cast %74 : vector<1x32x128xf32> to vector<32x128xf32>
    %76 = vector.shape_cast %73 : vector<32x128xf32> to vector<1x32x128xf32>
    tpu.vector_store %arg8[%c0_33, %c0_34, %c0_35], %76 {strides = array<i32>} : memref<1x32x128xf32, #tpu.memory_space<vmem>>, vector<1x32x128xf32>,
    return
  }
  func.func @transform_0(%arg0: i32) -> (i32, i32, i32) {
    %c0_i32 = arith.constant 0 : i32
    %c0_i32_0 = arith.constant 0 : i32
    %c0_i32_1 = arith.constant 0 : i32
    return %arg0, %c0_i32, %c0_i32_0 : i32, i32, i32
  }
  func.func @transform_1(%arg0: i32) -> (i32, i32) {
    %c0_i32 = arith.constant 0 : i32
    %c0_i32_0 = arith.constant 0 : i32
    %c0_i32_1 = arith.constant 0 : i32
    return %c0_i32, %c0_i32_0 : i32, i32
  }
  func.func @transform_2(%arg0: i32) -> (i32, i32) {
    %c0_i32 = arith.constant 0 : i32
    %c0_i32_0 = arith.constant 0 : i32
    %c0_i32_1 = arith.constant 0 : i32
    return %c0_i32, %c0_i32_0 : i32, i32
  }
  func.func @transform_3(%arg0: i32) -> (i32, i32) {
    %c0_i32 = arith.constant 0 : i32
    %c0_i32_0 = arith.constant 0 : i32
    %c0_i32_1 = arith.constant 0 : i32
    return %c0_i32, %c0_i32_0 : i32, i32
  }
  func.func @transform_4(%arg0: i32) -> (i32, i32) {
    %c0_i32 = arith.constant 0 : i32
    %c0_i32_0 = arith.constant 0 : i32
    %c0_i32_1 = arith.constant 0 : i32
    return %c0_i32, %c0_i32_0 : i32, i32
  }
  func.func @transform_5(%arg0: i32) -> (i32, i32) {
    %c0_i32 = arith.constant 0 : i32
    %c0_i32_0 = arith.constant 0 : i32
    %c0_i32_1 = arith.constant 0 : i32
    return %c0_i32, %c0_i32_0 : i32, i32
  }
  func.func @transform_6(%arg0: i32) -> (i32, i32) {
    %c0_i32 = arith.constant 0 : i32
    %c0_i32_0 = arith.constant 0 : i32
    %c0_i32_1 = arith.constant 0 : i32
    return %c0_i32, %c0_i32_0 : i32, i32
  }
  func.func @transform_7(%arg0: i32) -> (i32, i32, i32) {
    %c0_i32 = arith.constant 0 : i32
    %c0_i32_0 = arith.constant 0 : i32
    %c0_i32_1 = arith.constant 0 : i32
    return %arg0, %c0_i32, %c0_i32_0 : i32, i32, i32
  }
}

</mosaic_0001>

<bundles_post_ra>
// kernel: tpu_custom_call.1
= control target key start
LH: loop header
LB: loop body
LE: loop exit
PB: predicated region body
PF: predicated region fallthrough
CT: control target
= control target key end

     0   :  { %12 = vsyncpa [#allocation3], 0  ;;  %s3731_s0 = inlined_call_operand.vmem [shape: f32[2,32,128], index: 0, kind: input, shape index: {}]   ;;  %s3732_s1 = inlined_call_operand.vmem [shape: f32[96,32], index: 1, kind: input, shape index: {}]   ;;  %s3733_s2 = inlined_call_operand.vmem [shape: f32[96,1], index: 2, kind: input, shape index: {}]   ;;  %s3734_s3 = inlined_call_operand.vmem [shape: f32[32,32], index: 3, kind: input, shape index: {}]   ;;  %s3735_s4 = inlined_call_operand.vmem [shape: f32[32,1], index: 4, kind: input, shape index: {}]   ;;  %s3736_s5 = inlined_call_operand.vmem [shape: f32[128,8], index: 5, kind: input, shape index: {}]   ;;  %s3737_s6 = inlined_call_operand.vmem [shape: f32[8,128], index: 6, kind: input, shape index: {}]   ;;  %s3738_s7 = inlined_call_operand.hbm [shape: f32[2,32,128], index: 7, kind: output, shape index: {}]  }
   0x1   :  { %14 = vsyncpa [#allocation3 + $0x1], 0  ;;  %s3135_s24 = smov 0   ;;  %s3137_s25 = smov 0  }
   0x2   :  { %s3139_s26 = smov 0   ;;  %s3141_s27 = smov 0  }
   0x3 LB: > { %s3156_s28 = sadd.s32 4294967295, %s3088_s27   ;;  %s2439_s29 = sadd.s32 4294967294, %s3088_s27   ;;  %s3088_s27 = sphi %s3141_s27, %s3744_s27   ;;  %s3084_s26 = sphi %s3139_s26, %s3743_s26   ;;  %s3080_s25 = sphi %s3137_s25, %s3742_s25   ;;  %s3076_s24 = sphi %s3135_s24, %s3741_s24  }
   0x4   : > { %s3160_s30 = sadd.s32 1, %s3088_s27   ;;  %s179_s8 = sadd.s32 1, %s3084_s26 }
   0x5   : > { %s176_s9 = ssub.s32 %s3088_s27, %s3160_s30  ;;  %p189_p0 = scmp.ne.s32.totalorder %s3084_s26, %s3080_s25 }
   0x6   : > { %p177_p1 = scmp.eq.s32.totalorder %s176_s9, 0  ;;  %p190_p2 = scmp.eq.s32.totalorder %s3156_s28, 1 }
   0x7   : > { %p195_p3 = scmp.ne.s32.totalorder %s3080_s25, %s3076_s24  ;;  %p196_p4 = scmp.eq.s32.totalorder %s2439_s29, 1 }
   0x8   : > { %s3171_s10 = scalar_select %p177_p1, %s3084_s26, %s179_s8  }
   0x9   : > { %p3173_p5 = por %p190_p2, %p189_p0  ;;  %p3177_p6 = por %p196_p4, %p195_p3 }
   0xa   : > { %p2442_p7 = scmp.ge.s32.totalorder %s3088_s27, 1  ;;  %p240_p8 = scmp.lt.s32.totalorder %s3088_s27, 3 }
   0xc   : > { %p241_p9 = pnand %p2442_p7, %p240_p8 }
   0xd   : > { %p272_p10 = scmp.lt.s32.totalorder (!%p241_p9), %s3156_s28, 1  ;;  %v326_v20 = vld [vmem:[%s3732_s1] sm:$0xff] (!%p241_p9)  ;;  %vm410_vm0 = vcmask (!%p241_p9), 261120   ;;  %v343_v21 = vld [vmem:[%s3733_s2 + $0x28] sm:$0xff] (!%p241_p9)  ;;  %v3090_v23 = vmov (!%p241_p9), 0   ;;  %v344_v24 = vld [vmem:[%s3733_s2 + $0x30] sm:$0xff] (!%p241_p9) }
   0xe   : > { %244 = sbr.rel (%p241_p9) target bundleno = 1909 (0x775), region = 48  ;;  %2643 = vmatprep.mubr.msk.f32.mxu1 (!%p241_p9), %vm410_vm0, %v326_v20  ;;  %v342_v22 = vld [vmem:[%s3733_s2 + $0x20] sm:$0xff] (!%p241_p9)  ;;  %2981 = vset.pattern.permute.xlu1 (!%p241_p9), %v3090_v23  ;;  %v345_v25 = vld [vmem:[%s3733_s2 + $0x38] sm:$0xff] (!%p241_p9)  ;;  %v327_v48 = vld [vmem:[%s3732_s1 + $0x8] sm:$0xff] (!%p241_p9)  ;;  %vm766_vm1 = vcmask (!%p241_p9), 64512   ;;  %s269_s8 = sand.u32 (!%p241_p9), 1, %s3080_s25  }
   0xf   : > { %2980 = vset.pattern.permute.xlu0 (!%p241_p9), %v3090_v23  ;;  %v328_v49 = vld [vmem:[%s3732_s1 + $0x10] sm:$0xff] (!%p241_p9)  ;;  %v329_v50 = vld [vmem:[%s3732_s1 + $0x18] sm:$0xff] (!%p241_p9)  ;;  %v330_v51 = vld [vmem:[%s3732_s1 + $0x20] sm:$0xff] (!%p241_p9)  ;;  %s2443_s9 = sshll.u32 (!%p241_p9), %s269_s8, 5  ;;  %s2504_s15 = sshll.u32 (!%p241_p9), %s3156_s28, 9 }
  0x10   : > { %v331_v52 = vld [vmem:[%s3732_s1 + $0x28] sm:$0xff] (!%p241_p9)  ;;  %v332_v53 = vld [vmem:[%s3732_s1 + $0x30] sm:$0xff] (!%p241_p9)  ;;  %v333_v54 = vld [vmem:[%s3732_s1 + $0x38] sm:$0xff] (!%p241_p9)  ;;  %s3690_s19 = scalar_lea.sflag (!%p241_p9), [#allocation3], %s269_s8  ;;  %s3092_s21 = smov (!%p241_p9), [#allocation2]  }
  0x11   : > { %v334_v55 = vld [vmem:[%s3732_s1 + $0x40] sm:$0xff] (!%p241_p9)  ;;  %v335_v56 = vld [vmem:[%s3732_s1 + $0x48] sm:$0xff] (!%p241_p9)  ;;  %v336_v57 = vld [vmem:[%s3732_s1 + $0x50] sm:$0xff] (!%p241_p9)  ;;  %s3030_s22 = sshll.u32 (!%p241_p9), %s3092_s21, 4  ;;  %s3031_s22 = int_to_ptr.vmem [resolvable:$false] %s3030_s22 }
  0x12   : > { %v337_v58 = vld [vmem:[%s3732_s1 + $0x58] sm:$0xff] (!%p241_p9)  ;;  %v664_v59 = vld [vmem:[%s3736_s5] sm:$0xff] (!%p241_p9)  ;;  %v665_v60 = vld [vmem:[%s3736_s5 + $0x8] sm:$0xff] (!%p241_p9)  ;;  %s3032_s23 = scalar_lea.vmem (!%p241_p9), %s3031_s22, 1024 }
  0x13   : > { %v666_v61 = vld [vmem:[%s3736_s5 + $0x10] sm:$0xff] (!%p241_p9)  ;;  %v3263_v62 = vpack.c.bf16 (!%p241_p9), %v665_v60, %v664_v59  ;;  %v667_v63 = vld [vmem:[%s3736_s5 + $0x18] sm:$0xff] (!%p241_p9)  ;;  %v672_v23 = vld [vmem:[%s3736_s5 + $0x40] sm:$0xff] (!%p241_p9) }
  0x15   : > { %s273_s13 = scalar_select %p272_p10, %s3156_s28, 1 }
  0x16   : > { %s3684_s28 = scalar_lea.hbm %s3738_s7, %s2504_s15 }
  0x17   : > { %s2503_s14 = sshll.u32 %s273_s13, 5  ;;  %s271_s13 = scalar_lea.vmem [#allocation2], %s2443_s9 }
  0x18   : > { %s3188_s17 = scalar_lea.vmem %s3731_s0, %s2503_s14  ;;  %s2377_s14 = sshll.u32 %s271_s13, 4  ;;  %s3678_s14 = int_to_ptr.vmem [resolvable:$true] %s2377_s14 }
  0x19   : > { %v277_v0 = vld [vmem:[%s3188_s17] sm:$0xff]  ;;  %v279_v1 = vld [vmem:[%s3188_s17 + $0x10] sm:$0xff]  ;;  %v278_v2 = vld [vmem:[%s3188_s17 + $0x8] sm:$0xff]  ;;  %s3026_s20 = scalar_lea.vmem %s3678_s14, 512  ;;  %p3033_p0 = scmp.lt.s32.totalorder %s3678_s14, %s3031_s22 }
  0x1a   : > { %281 = vadd.xlane.f32.xlu0 %v277_v0  ;;  %285 = vadd.xlane.f32.xlu1 %v279_v1  ;;  %v280_v3 = vld [vmem:[%s3188_s17 + $0x18] sm:$0xff]  ;;  %p3027_p11 = scmp.ne.s32.totalorder %s3678_s14, %s3026_s20  ;;  %p3034_p1 = scmp.lt.s32.totalorder %s3032_s23, %s3026_s20 }
  0x1c   : > { %p3028_p12 = pnand %p3027_p11, %p3173_p5  ;;  %p3035_p2 = por %p3034_p1, %p3033_p0 }
  0x1e   : > { %283 = vadd.xlane.f32.xlu0 %v278_v2  ;;  %287 = vadd.xlane.f32.xlu1 %v280_v3  ;;  %p3029_p13 = pneg %p3028_p12 }
  0x20   : > { %p3036_p3 = pnand %p3035_p2, %p3029_p13 }
  0xa7   : > { %v282_v4 = vpop.xlane.xlu0 %281  ;;  %v286_v5 = vpop.xlane.xlu1 %285 }
  0xa8   : > { %v290_v6 = vmul.f32 0.0078125, %v282_v4  ;;  %v292_v7 = vmul.f32 0.0078125, %v286_v5  ;;  %v670_v4 = vld [vmem:[%s3736_s5 + $0x30] sm:$0xff]  ;;  %v671_v5 = vld [vmem:[%s3736_s5 + $0x38] sm:$0xff] }
  0xaa   : > { %v294_v8 = vsub.f32 %v277_v0, %v290_v6  ;;  %v296_v9 = vsub.f32 %v279_v1, %v292_v7  ;;  %v3268_v0 = vpack.c.bf16 %v667_v63, %v666_v61  ;;  %v668_v1 = vld [vmem:[%s3736_s5 + $0x20] sm:$0xff]  ;;  %v3289_v6 = vpack.c.bf16 %v671_v5, %v670_v4 }
  0xab   : > { %v284_v10 = vpop.xlane.xlu0 %283  ;;  %v288_v11 = vpop.xlane.xlu1 %287 }
  0xac   : > { %v291_v12 = vmul.f32 0.0078125, %v284_v10  ;;  %v298_v13 = vmul.f32 %v294_v8, %v294_v8  ;;  %v293_v14 = vmul.f32 0.0078125, %v288_v11  ;;  %v300_v17 = vmul.f32 %v296_v9, %v296_v9 }
  0xae   : > { %v295_v15 = vsub.f32 %v278_v2, %v291_v12  ;;  %302 = vadd.xlane.f32.xlu0 %v298_v13  ;;  %v297_v16 = vsub.f32 %v280_v3, %v293_v14  ;;  %v669_v2 = vld [vmem:[%s3736_s5 + $0x28] sm:$0xff] }
  0xaf   : > { %v3279_v3 = vpack.c.bf16 %v669_v2, %v668_v1 }
  0xb0   : > { %v299_v18 = vmul.f32 %v295_v15, %v295_v15  ;;  %v301_v19 = vmul.f32 %v297_v16, %v297_v16 }
  0xb2   : > { %306 = vadd.xlane.f32.xlu0 %v300_v17  ;;  %304 = vadd.xlane.f32.xlu1 %v299_v18 }
  0xb6   : > { %308 = vadd.xlane.f32.xlu1 %v301_v19 }
  0xc7   : > { %377 = vperm.xlu1 %2981, %v343_v21  }
  0xc8   : > { %372 = vperm.xlu0 %2980, %v342_v22  }
  0xcb   : > { %382 = vperm.xlu1 %2981, %v344_v24   ;;  %v673_v24 = vld [vmem:[%s3736_s5 + $0x48] sm:$0xff] }
  0xcf   : > { %387 = vperm.xlu1 %2981, %v345_v25   ;;  %v3320_v25 = vpack.c.bf16 %v673_v24, %v672_v23 }
 0x13b   : > { %v303_v26 = vpop.xlane.xlu0 %302 }
 0x13c   : > { %v310_v27 = vmul.f32 0.0078125, %v303_v26  ;;  %v674_v26 = vld [vmem:[%s3736_s5 + $0x50] sm:$0xff] }
 0x13e   : > { %v314_v28 = vadd.f32 1e-05, %v310_v27  ;;  %v675_v27 = vld [vmem:[%s3736_s5 + $0x58] sm:$0xff] }
 0x13f   : > { %v305_v29 = vpop.xlane.xlu1 %304  ;;  %v307_v30 = vpop.xlane.xlu0 %306 }
 0x140   : > { %v311_v31 = vmul.f32 0.0078125, %v305_v29  ;;  %v312_v32 = vmul.f32 0.0078125, %v307_v30  ;;  %2982 = vrsqrt.f32 %v314_v28  ;;  %v3330_v28 = vpack.c.bf16 %v675_v27, %v674_v26  ;;  %v347_v29 = vld [vmem:[%s3733_s2 + $0x48] sm:$0xff]  ;;  %v676_v30 = vld [vmem:[%s3736_s5 + $0x60] sm:$0xff] }
 0x142   : > { %v315_v33 = vadd.f32 1e-05, %v311_v31  ;;  %v316_v34 = vadd.f32 1e-05, %v312_v32  ;;  %v677_v31 = vld [vmem:[%s3736_s5 + $0x68] sm:$0xff] }
 0x143   : > { %v309_v35 = vpop.xlane.xlu1 %308 }
 0x144   : > { %2984 = vrsqrt.f32 %v315_v33  ;;  %v313_v36 = vmul.f32 0.0078125, %v309_v35  ;;  %v3345_v33 = vpack.c.bf16 %v677_v31, %v676_v30  ;;  %v346_v35 = vld [vmem:[%s3733_s2 + $0x40] sm:$0xff] }
 0x145   : > { %2986 = vrsqrt.f32 %v316_v34  ;;  %v339_v34 = vld [vmem:[%s3733_s2 + $0x8] sm:$0xff] }
 0x146   : > { %v317_v37 = vadd.f32 1e-05, %v313_v36  ;;  %v678_v36 = vld [vmem:[%s3736_s5 + $0x70] sm:$0xff] }
 0x147   : > { %v378_v10 = vpop.permute.xlu1 %377  ;;  %v373_v12 = vpop.permute.xlu0 %372 }
 0x148   : > { %2988 = vrsqrt.f32 %v317_v37  ;;  %v679_v37 = vld [vmem:[%s3736_s5 + $0x78] sm:$0xff] }
 0x14a   : > { %v2983_v38 = vpop.eup %2982 }
 0x14b   : > { %v322_v40 = vmul.f32 %v2983_v38, %v294_v8  ;;  %v383_v17 = vpop.permute.xlu1 %382  ;;  %v3361_v38 = vpack.c.bf16 %v679_v37, %v678_v36 }
 0x14e   : > { %v2985_v39 = vpop.eup %2984 }
 0x14f   : > { %v323_v41 = vmul.f32 %v2985_v39, %v295_v15  ;;  %v2987_v42 = vpop.eup %2986  ;;  %v388_v21 = vpop.permute.xlu1 %387  ;;  %v341_v39 = vld [vmem:[%s3733_s2 + $0x18] sm:$0xff] }
 0x150   : > { %v324_v45 = vmul.f32 %v2987_v42, %v296_v9 }
 0x151   : > { %v2851_v43 = vpack.c.bf16 %v323_v41, %v322_v40  ;;  %v348_v40 = vld [vmem:[%s3733_s2 + $0x50] sm:$0xff] }
 0x152   : > { %v2989_v44 = vpop.eup %2988 }
 0x153   : > { %2852 = vmatprep.subr.bf16.mxu1 %v2851_v43  ;;  %v325_v46 = vmul.f32 %v2989_v44, %v297_v16  ;;  %v349_v44 = vld [vmem:[%s3733_s2 + $0x58] sm:$0xff] }
 0x154   : > { %2854 = vmatpush3.bf16.msra.mxu1 %v2851_v43  ;;  %v2235_v43 = vld [vmem:[%s3735_s4 + $0x8] sm:$0xff] }
 0x155   : > { %v2855_v47 = vpack.c.bf16 %v325_v46, %v324_v45  ;;  %v2237_v46 = vld [vmem:[%s3735_s4 + $0x18] sm:$0xff] }
 0x157   : > { %2856 = vmatprep.subr.bf16.mxu1 %v2855_v47 }
 0x158   : > { %2858 = vmatpush3.bf16.msra.mxu1 %v2855_v47  ;;  %v338_v47 = vld [vmem:[%s3733_s2] sm:$0xff] }
 0x159   : > { %2860 = vmatprep.subr.bf16.mxu1 %v3263_v62 }
 0x15b   : > { %2644 = vmatmul.mubr.msk.f32.vlgmr.msra.gmra.mrb[0].mxu1 %vm410_vm0, %v327_v48  ;;  %v340_v48 = vld [vmem:[%s3733_s2 + $0x10] sm:$0xff] }
 0x15c   : > { %2646 = vmatprep.mubr.msk.f32.mxu1 %vm410_vm0, %v328_v49  ;;  %2862 = vmatpush3.bf16.msra.mxu1 %v3263_v62  ;;  %v2234_v49 = vld [vmem:[%s3735_s4] sm:$0xff] }
 0x15d   : > { %2864 = vmatprep.subr.bf16.mxu1 %v3268_v0 }
 0x15f   : > { %2647 = vmatmul.mubr.msk.f32.gmra.mrb[2].mxu1 %vm410_vm0, %v329_v50  ;;  %v2236_v50 = vld [vmem:[%s3735_s4 + $0x10] sm:$0xff] }
 0x160   : > { %2649 = vmatprep.mubr.msk.f32.mxu1 %vm410_vm0, %v330_v51  ;;  %2866 = vmatpush3.bf16.msra.mxu1 %v3268_v0 }
 0x161   : > { %2868 = vmatprep.subr.bf16.mxu1 %v3279_v3 }
 0x163   : > { %2650 = vmatmul.mubr.msk.f32.gmra.mrb[4].mxu1 %vm410_vm0, %v331_v52 }
 0x164   : > { %2652 = vmatprep.mubr.msk.f32.mxu1 %vm410_vm0, %v332_v53  ;;  %2870 = vmatpush3.bf16.msra.mxu1 %v3279_v3 }
 0x165   : > { %2872 = vmatprep.subr.bf16.mxu1 %v3289_v6 }
 0x167   : > { %2653 = vmatmul.mubr.msk.f32.gmra.mrb[6].mxu1 %vm410_vm0, %v333_v54 }
 0x168   : > { %2655 = vmatprep.mubr.msk.f32.mxu1 %vm410_vm0, %v334_v55  ;;  %2874 = vmatpush3.bf16.msra.mxu1 %v3289_v6 }
 0x169   : > { %2876 = vmatprep.subr.bf16.mxu1 %v3320_v25 }
 0x16b   : > { %2656 = vmatmul.mubr.msk.f32.gmra.mrb[8].mxu1 %vm410_vm0, %v335_v56 }
 0x16c   : > { %2658 = vmatprep.mubr.msk.f32.mxu1 %vm410_vm0, %v336_v57  ;;  %2878 = vmatpush3.bf16.msra.mxu1 %v3320_v25 }
 0x16d   : > { %2880 = vmatprep.subr.bf16.mxu1 %v3330_v28 }
 0x16f   : > { %2659 = vmatmul.mubr.msk.f32.gmra.mrb[10].mxu1 %vm410_vm0, %v337_v58 }
 0x170   : > { %2882 = vmatpush3.bf16.msra.mxu1 %v3330_v28 }
 0x171   : > { %2884 = vmatprep.subr.bf16.mxu1 %v3345_v33 }
 0x174   : > { %2886 = vmatpush3.bf16.msra.mxu1 %v3345_v33 }
 0x175   : > { %2888 = vmatprep.subr.bf16.mxu1 %v3361_v38 }
 0x178   : > { %2890 = vmatpush3.bf16.msra.mxu1 %v3361_v38 }
 0x22e   : > { %v3294_v7 = vpop.f32.mrb[0].mxu1 }
 0x22f   : > { %v3296_v8 = vpop.f32.mrb[1].mxu1 }
 0x232   : > { %v3298_v9 = vpop.f32.mrb[2].mxu1 }
 0x233   : > { %v3300_v11 = vpop.f32.mrb[3].mxu1 }
 0x236   : > { %v2651_v13 = vpop.f32.mrb[4].mxu1 }
 0x237   : > { %v3302_v14 = vadd.f32 %v2651_v13, %v378_v10  ;;  %v533_v15 = vpop.f32.mrb[5].mxu1  ;;  %v3411_v10 = vld [vmem:[%s3737_s6] sm:$0xff] }
 0x238   : > { %v3304_v16 = vadd.f32 %v533_v15, %v373_v12  ;;  %2699 = vmatprep.subr.mxu0 %v3411_v10  ;;  %2931 = vmatprep.subr.mxu1 %v3411_v10 }
 0x239   : > { %646 = vmax.xlane.f32.xlu0 %v3302_v14  ;;  %2700 = vmatpush3.msra.mxu0 %v3411_v10 }
 0x23a   : > { %v2654_v18 = vpop.f32.mrb[6].mxu1  ;;  %644 = vmax.xlane.f32.xlu1 %v3304_v16  ;;  %2892 = vmatprep.subr.bf16.mxu0 %v3263_v62 }
 0x23b   : > { %v543_v19 = vpop.f32.mrb[7].mxu1  ;;  %v3311_v22 = vadd.f32 %v2654_v18, %v388_v21 }
 0x23c   : > { %v3308_v20 = vadd.f32 %v543_v19, %v383_v17  ;;  %v880_v17 = vlaneseq }
 0x23e   : > { %648 = vmax.xlane.f32.xlu1 %v3308_v20  ;;  %v3343_v32 = vpop.f32.mrb[8].mxu1 }
 0x23f   : > { %v3369_v41 = vpop.f32.mrb[9].mxu1 }
 0x242   : > { %650 = vmax.xlane.f32.xlu1 %v3311_v22  ;;  %v3373_v42 = vpop.f32.mrb[10].mxu1 }
 0x243   : > { %v3381_v45 = vpop.f32.mrb[11].mxu1 }
 0x24f   : > { %397 = vperm.xlu0 %2980, %v347_v29  }
 0x253   : > { %357 = vperm.xlu0 %2980, %v339_v34   ;;  %392 = vperm.xlu1 %2981, %v346_v35  }
 0x257   : > { %367 = vperm.xlu0 %2980, %v341_v39   ;;  %402 = vperm.xlu1 %2981, %v348_v40  }
 0x25b   : > { %2245 = vperm.xlu0 %2980, %v2235_v43   ;;  %407 = vperm.xlu1 %2981, %v349_v44  }
 0x25f   : > { %2255 = vperm.xlu0 %2980, %v2237_v46   ;;  %352 = vperm.xlu1 %2981, %v338_v47  }
 0x263   : > { %362 = vperm.xlu1 %2981, %v340_v48  }
 0x267   : > { %2240 = vperm.xlu1 %2981, %v2234_v49  }
 0x26b   : > { %2250 = vperm.xlu1 %2981, %v2236_v50  }
 0x2c6   : > { %v647_v51 = vpop.xlane.xlu0 %646 }
 0x2c7   : > { %v653_v52 = vsub.f32 %v3302_v14, %v647_v51  ;;  %v645_v53 = vpop.xlane.xlu1 %644 }
 0x2c8   : > { %v652_v54 = vsub.f32 %v3304_v16, %v645_v53 }
 0x2c9   : > { %v658_v55 = vmul.f32 1.442695, %v653_v52 }
 0x2ca   : > { %v656_v56 = vmul.f32 1.442695, %v652_v54 }
 0x2cb   : > { %v649_v57 = vpop.xlane.xlu1 %648 }
 0x2cc   : > { %2990 = vpow2.f32 %v656_v56  ;;  %v654_v58 = vsub.f32 %v3308_v20, %v649_v57 }
 0x2cd   : > { %2992 = vpow2.f32 %v658_v55 }
 0x2ce   : > { %v660_v59 = vmul.f32 1.442695, %v654_v58 }
 0x2cf   : > { %v651_v60 = vpop.xlane.xlu1 %650 }
 0x2d0   : > { %2994 = vpow2.f32 %v660_v59  ;;  %v655_v61 = vsub.f32 %v3311_v22, %v651_v60  ;;  %v881_v22 = vshrl.u32 %v880_v17, 7 }
 0x2d2   : > { %v662_v63 = vmul.f32 1.442695, %v655_v61  ;;  %v3440_v30 = vsub.s32 0, %v881_v22 }
 0x2d4   : > { %2996 = vpow2.f32 %v662_v63 }
 0x2d6   : > { %v2991_v1 = vpop.eup %2990 }
 0x2d7   : > { %v2993_v2 = vpop.eup %2992  ;;  %2693 = vmatprep.mubr.f32.mxu1 %v2991_v1 }
 0x2d8   : > { %2694 = vmatmul.mubr.f32.vlgmr.msra.gmra.mrb[12].mxu1 %v2993_v2 }
 0x2d9   : > { %2932 = vmatpush3.msra.mxu1 %v3411_v10 }
 0x2da   : > { %v3402_v4 = vpop.eup %2994 }
 0x2db   : > { %2696 = vmatprep.mubr.f32.mxu1 %v3402_v4 }
 0x2de   : > { %v3405_v5 = vpop.eup %2996 }
 0x2df   : > { %2697 = vmatmul.mubr.f32.gmra.mrb[14].mxu1 %v3405_v5 }
 0x3ab   : > { %v2695_v12 = vpop.f32.mrb[12].mxu1 }
 0x3ac   : > { %v746_v13 = vpop.f32.mrb[13].mxu1 }
 0x3ad   : > { %2701 = vmatprep.mubr.msk.f32.mxu0 %vm766_vm1, %v746_v13 }
 0x3ae   : > { %2702 = vmatmul.mubr.msk.f32.vlgmr.msra.gmra.mrb[0].mxu0 %vm766_vm1, %v2695_v12 }
 0x3af   : > { %2894 = vmatpush3.bf16.msra.mxu0 %v3263_v62 }
 0x3b0   : > { %2896 = vmatprep.subr.bf16.mxu0 %v3268_v0 }
 0x3b2   : > { %v2698_v14 = vpop.f32.mrb[14].mxu1 }
 0x3b3   : > { %v756_v15 = vpop.f32.mrb[15].mxu1  ;;  %2898 = vmatpush3.bf16.msra.mxu0 %v3268_v0 }
 0x3b4   : > { %2704 = vmatprep.mubr.msk.f32.mxu0 %vm766_vm1, %v756_v15  ;;  %2900 = vmatprep.subr.bf16.mxu0 %v3279_v3 }
 0x3b5   : > { %2705 = vmatmul.mubr.msk.f32.gmra.mrb[2].mxu0 %vm766_vm1, %v2698_v14 }
 0x3b7   : > { %2902 = vmatpush3.bf16.msra.mxu0 %v3279_v3  ;;  %v393_v3 = vpop.permute.xlu1 %392 }
 0x3b8   : > { %2904 = vmatprep.subr.bf16.mxu0 %v3289_v6  ;;  %v554_v35 = vadd.f32 %v3369_v41, %v393_v3 }
 0x3bb   : > { %2906 = vmatpush3.bf16.msra.mxu0 %v3289_v6  ;;  %v3091_v6 = vmov 1966171168   ;;  %v403_v19 = vpop.permute.xlu1 %402 }
 0x3bc   : > { %2908 = vmatprep.subr.bf16.mxu0 %v3320_v25  ;;  %v878_v16 = vunpack.c.l.s4 %v3091_v6 }
 0x3be   : > { %v879_v21 = vunpack.c.0.s8 %v878_v16 }
 0x3bf   : > { %2910 = vmatpush3.bf16.msra.mxu0 %v3320_v25  ;;  %v398_v25 = vpop.permute.xlu0 %397  ;;  %v408_v29 = vpop.permute.xlu1 %407 }
 0x3c0   : > { %2912 = vmatprep.subr.bf16.mxu0 %v3330_v28  ;;  %v3438_v27 = vsub.s32 %v879_v21, %v881_v22  ;;  %v3444_v34 = vadd.f32 %v3343_v32, %v398_v25  ;;  %v3454_v44 = vadd.f32 %v3373_v42, %v408_v29 }
 0x3c3   : > { %2914 = vmatpush3.bf16.msra.mxu0 %v3330_v28 }
 0x3c4   : > { %2916 = vmatprep.subr.bf16.mxu0 %v3345_v33 }
 0x3c7   : > { %2918 = vmatpush3.bf16.msra.mxu0 %v3345_v33 }
 0x3c8   : > { %2920 = vmatprep.subr.bf16.mxu0 %v3361_v38 }
 0x3cb   : > { %2922 = vmatpush3.bf16.msra.mxu0 %v3361_v38  ;;  %v3449_v38 = vadd.f32 %v3381_v45, %v403_v19 }
 0x3cc   : > { %2787 = vmatprep.subr.mxu0 %v3411_v10 }
 0x481   : > { %v2703_v62 = vpop.f32.mrb[0].mxu0 }
 0x482   : > { %2998 = vrcp.f32 %v2703_v62  ;;  %v845_v0 = vpop.f32.mrb[1].mxu0 }
 0x483   : > { %3000 = vrcp.f32 %v845_v0 }
 0x488   : > { %v2706_v18 = vpop.f32.mrb[2].mxu0 }
 0x489   : > { %3002 = vrcp.f32 %v2706_v18  ;;  %v855_v20 = vpop.f32.mrb[3].mxu0 }
 0x48a   : > { %3004 = vrcp.f32 %v855_v20 }
 0x48c   : > { %v2999_v23 = vpop.eup %2998 }
 0x48d   : > { %v3001_v24 = vpop.eup %3000  ;;  %v869_v26 = vmul.f32 %v2999_v23, %v2993_v2 }
 0x48e   : > { %v868_v28 = vmul.f32 %v3001_v24, %v2991_v1 }
 0x48f   : > { %v932_v31 = vrot.slane %v869_v26, %v3438_v27  ;;  %v925_v33 = vcombine.high %v869_v26, %v869_v26 }
 0x490   : > { %v883_v36 = vrot.slane %v868_v28, %v3438_v27  ;;  %v876_v37 = vcombine.high %v868_v28, %v868_v28 }
 0x491   : > { %v948_v39 = vrot.slane %v932_v31, %v3438_v27  ;;  %v940_v40 = vcombine.high %v932_v31, %v932_v31  ;;  %v939_v43 = vrot.slane %v925_v33, %v3438_v27 }
 0x492   : > { %v891_v46 = vcombine.high %v883_v36, %v883_v36  ;;  %v899_v32 = vrot.slane %v883_v36, %v3438_v27  ;;  %v890_v47 = vrot.slane %v876_v37, %v3438_v27 }
 0x493   : > { %v3003_v41 = vpop.eup %3002  ;;  %v1107_v48 = vrot.slane %v948_v39, %v3440_v30  ;;  %v962_v49 = vrot.slane %v940_v40, %v3438_v27  ;;  %v970_v45 = vcombine.high %v948_v39, %v948_v39  ;;  %v955_v50 = vrot.slane %v939_v43, %v3438_v27 }
 0x494   : > { %v3005_v51 = vpop.eup %3004  ;;  %v3462_v52 = vmul.f32 %v3003_v41, %v3405_v5  ;;  %v913_v42 = vrot.slane %v891_v46, %v3438_v27  ;;  %v1075_v53 = vrot.slane %v899_v32, %v3440_v30  ;;  %v921_v54 = vcombine.high %v899_v32, %v899_v32 }
 0x495   : > { %v870_v55 = vmul.f32 %v3005_v51, %v3402_v4  ;;  %v906_v56 = vrot.slane %v890_v47, %v3438_v27  ;;  %v892_v57 = vcombine.high %v890_v47, %v890_v47  ;;  %v3469_v58 = vmul.f32 %v1107_v48, %v3444_v34 }
 0x496   : > { %v1232_v59 = vmul.f32 %v1075_v53, %v554_v35  ;;  %v1079_v60 = vrot.slane %v913_v42, %v3440_v30  ;;  %v1083_v61 = vrot.slane %v921_v54, %v3440_v30  ;;  %v923_v63 = vcombine.high %v913_v42, %v913_v42 }
 0x497   : > { %v1091_v1 = vrot.slane %v906_v56, %v3440_v30  ;;  %v920_v2 = vrot.slane %v892_v57, %v3438_v27  ;;  %v922_v5 = vcombine.high %v906_v56, %v906_v56  ;;  %v1111_v12 = vrot.slane %v962_v49, %v3440_v30 }
 0x498   : > { %2739 = vmatprep.mubr.f32.mxu0 %v1232_v59  ;;  %v1233_v4 = vmul.f32 %v1079_v60, %v554_v35  ;;  %v1234_v13 = vmul.f32 %v1083_v61, %v554_v35  ;;  %v1087_v14 = vrot.slane %v923_v63, %v3440_v30  ;;  %v1115_v15 = vrot.slane %v970_v45, %v3440_v30 }
 0x499   : > { %v1236_v62 = vmul.f32 %v1091_v1, %v554_v35  ;;  %v1095_v0 = vrot.slane %v920_v2, %v3440_v30  ;;  %v1099_v3 = vrot.slane %v922_v5, %v3440_v30  ;;  %v924_v6 = vcombine.high %v920_v2, %v920_v2 }
 0x49a   : > { %2740 = vmatmul.mubr.f32.vlgmr.msra.gmra.mrb[4].mxu0 %v1233_v4  ;;  %v1235_v16 = vmul.f32 %v1087_v14, %v554_v35  ;;  %v3481_v17 = vmul.f32 %v1111_v12, %v3444_v34  ;;  %v3484_v18 = vmul.f32 %v1115_v15, %v3444_v34  ;;  %v972_v19 = vcombine.high %v962_v49, %v962_v49 }
 0x49b   : > { %2742 = vmatprep.mubr.f32.mxu0 %v1234_v13  ;;  %v1237_v20 = vmul.f32 %v1095_v0, %v554_v35  ;;  %v1238_v21 = vmul.f32 %v1099_v3, %v554_v35  ;;  %v1103_v22 = vrot.slane %v924_v6, %v3440_v30  ;;  %v1123_v23 = vrot.slane %v955_v50, %v3440_v30 }
 0x49c   : > { %v1119_v24 = vrot.slane %v972_v19, %v3440_v30  ;;  %v941_v25 = vcombine.high %v939_v43, %v939_v43  ;;  %v971_v26 = vcombine.high %v955_v50, %v955_v50  ;;  %v981_v28 = vrot.slane %v870_v55, %v3438_v27  ;;  %2788 = vmatpush3.msra.mxu0 %v3411_v10 }
 0x49d   : > { %v1239_v29 = vmul.f32 %v1103_v22, %v554_v35  ;;  %v3492_v31 = vmul.f32 %v1123_v23, %v3444_v34  ;;  %v974_v33 = vcombine.high %v870_v55, %v870_v55  ;;  %v1030_v36 = vrot.slane %v3462_v52, %v3438_v27 }
 0x49e   : > { %2743 = vmatmul.mubr.f32.gmra.mrb[6].mxu0 %v1235_v16  ;;  %v3497_v37 = vmul.f32 %v1119_v24, %v3444_v34  ;;  %v969_v39 = vrot.slane %v941_v25, %v3438_v27  ;;  %v1131_v40 = vrot.slane %v971_v26, %v3440_v30  ;;  %v997_v43 = vrot.slane %v981_v28, %v3438_v27 }
 0x49f   : > { %2745 = vmatprep.mubr.f32.mxu0 %v1236_v62  ;;  %v989_v10 = vcombine.high %v981_v28, %v981_v28  ;;  %v988_v35 = vrot.slane %v974_v33, %v3438_v27  ;;  %v1046_v46 = vrot.slane %v1030_v36, %v3438_v27  ;;  %v1038_v32 = vcombine.high %v1030_v36, %v1030_v36 }
 0x4a0   : > { %v1127_v47 = vrot.slane %v969_v39, %v3440_v30  ;;  %v1246_v41 = vmul.f32 %v1131_v40, %v3444_v34  ;;  %v973_v48 = vcombine.high %v969_v39, %v969_v39  ;;  %v1139_v49 = vrot.slane %v997_v43, %v3440_v30 }
 0x4a1   : > { %v1011_v45 = vrot.slane %v989_v10, %v3438_v27  ;;  %v1019_v50 = vcombine.high %v997_v43, %v997_v43  ;;  %v1004_v51 = vrot.slane %v988_v35, %v3438_v27  ;;  %v990_v42 = vcombine.high %v988_v35, %v988_v35 }
 0x4a2   : > { %2746 = vmatmul.mubr.f32.gmra.mrb[8].mxu0 %v1237_v20  ;;  %v1245_v53 = vmul.f32 %v1127_v47, %v3444_v34  ;;  %v1135_v54 = vrot.slane %v973_v48, %v3440_v30  ;;  %v1248_v55 = vmul.f32 %v1139_v49, %v3449_v38  ;;  %v1171_v56 = vrot.slane %v1046_v46, %v3440_v30 }
 0x4a3   : > { %2748 = vmatprep.mubr.f32.mxu0 %v1238_v21  ;;  %v1143_v57 = vrot.slane %v1011_v45, %v3440_v30  ;;  %v1147_v59 = vrot.slane %v1019_v50, %v3440_v30  ;;  %v1021_v60 = vcombine.high %v1011_v45, %v1011_v45  ;;  %v1155_v61 = vrot.slane %v1004_v51, %v3440_v30 }
 0x4a4   : > { %v1247_v63 = vmul.f32 %v1135_v54, %v3444_v34  ;;  %v1018_v1 = vrot.slane %v990_v42, %v3438_v27  ;;  %v1020_v2 = vcombine.high %v1004_v51, %v1004_v51  ;;  %v1256_v5 = vmul.f32 %v1171_v56, %v3454_v44 }
 0x4a5   : > { %v1249_v12 = vmul.f32 %v1143_v57, %v3449_v38  ;;  %v1250_v4 = vmul.f32 %v1147_v59, %v3449_v38  ;;  %v1151_v13 = vrot.slane %v1021_v60, %v3440_v30  ;;  %v1252_v14 = vmul.f32 %v1155_v61, %v3449_v38 }
 0x4a6   : > { %2749 = vmatmul.mubr.f32.gmra.mrb[10].mxu0 %v1239_v29  ;;  %v1159_v15 = vrot.slane %v1018_v1, %v3440_v30  ;;  %v1163_v62 = vrot.slane %v1020_v2, %v3440_v30  ;;  %v1022_v0 = vcombine.high %v1018_v1, %v1018_v1  ;;  %v1060_v34 = vrot.slane %v1038_v32, %v3438_v27 }
 0x4a7   : > { %2751 = vmatprep.mubr.f32.mxu0 %v3469_v58  ;;  %v1251_v3 = vmul.f32 %v1151_v13, %v3449_v38  ;;  %v1068_v6 = vcombine.high %v1046_v46, %v1046_v46  ;;  %v1023_v16 = vcombine.high %v3462_v52, %v3462_v52 }
 0x4a8   : > { %v1253_v19 = vmul.f32 %v1159_v15, %v3449_v38  ;;  %v1254_v20 = vmul.f32 %v1163_v62, %v3449_v38  ;;  %v1167_v21 = vrot.slane %v1022_v0, %v3440_v30  ;;  %v1175_v22 = vrot.slane %v1060_v34, %v3440_v30 }
 0x4a9   : > { %v1179_v23 = vrot.slane %v1068_v6, %v3440_v30  ;;  %v1070_v24 = vcombine.high %v1060_v34, %v1060_v34  ;;  %v1037_v25 = vrot.slane %v1023_v16, %v3438_v27  ;;  %v353_v16 = vpop.permute.xlu1 %352 }
 0x4aa   : > { %2752 = vmatmul.mubr.f32.gmra.mrb[12].mxu0 %v3481_v17  ;;  %v1255_v58 = vmul.f32 %v1167_v21, %v3449_v38  ;;  %v1257_v26 = vmul.f32 %v1175_v22, %v3454_v44 }
 0x4ab   : > { %2754 = vmatprep.mubr.f32.mxu0 %v3484_v18  ;;  %v1258_v52 = vmul.f32 %v1179_v23, %v3454_v44  ;;  %v1183_v28 = vrot.slane %v1070_v24, %v3440_v30  ;;  %v1053_v29 = vrot.slane %v1037_v25, %v3438_v27  ;;  %v1039_v33 = vcombine.high %v1037_v25, %v1037_v25  ;;  %v358_v23 = vpop.permute.xlu0 %357 }
 0x4ac   : > { %v519_v24 = vadd.f32 %v3294_v7, %v358_v23 }
 0x4ad   : > { %v1259_v36 = vmul.f32 %v1183_v28, %v3454_v44  ;;  %v1187_v39 = vrot.slane %v1053_v29, %v3440_v30  ;;  %v1067_v40 = vrot.slane %v1039_v33, %v3438_v27  ;;  %v1069_v17 = vcombine.high %v1053_v29, %v1053_v29 }
 0x4ae   : > { %2755 = vmatmul.mubr.f32.gmra.mrb[14].mxu0 %v3497_v37 }
 0x4af   : > { %2757 = vmatprep.mubr.f32.mxu0 %v3492_v31  ;;  %v1260_v38 = vmul.f32 %v1187_v39, %v3454_v44  ;;  %v1191_v18 = vrot.slane %v1067_v40, %v3440_v30  ;;  %v1195_v43 = vrot.slane %v1069_v17, %v3440_v30  ;;  %v1071_v10 = vcombine.high %v1067_v40, %v1067_v40  ;;  %v368_v7 = vpop.permute.xlu0 %367 }
 0x4b1   : > { %v1261_v35 = vmul.f32 %v1191_v18, %v3454_v44  ;;  %v1262_v46 = vmul.f32 %v1195_v43, %v3454_v44  ;;  %v1199_v32 = vrot.slane %v1071_v10, %v3440_v30 }
 0x4b2   : > { %2758 = vmatmul.mubr.f32.gmra.mrb[16].mxu0 %v1245_v53 }
 0x4b3   : > { %2760 = vmatprep.mubr.f32.mxu0 %v1246_v41  ;;  %v1263_v47 = vmul.f32 %v1199_v32, %v3454_v44 }
 0x4b6   : > { %2761 = vmatmul.mubr.f32.gmra.mrb[18].mxu0 %v1247_v63 }
 0x4b7   : > { %2763 = vmatprep.mubr.f32.mxu0 %v1248_v55 }
 0x4ba   : > { %2764 = vmatmul.mubr.f32.gmra.mrb[20].mxu0 %v1249_v12 }
 0x4bb   : > { %2766 = vmatprep.mubr.f32.mxu0 %v1250_v4 }
 0x4be   : > { %2767 = vmatmul.mubr.f32.gmra.mrb[22].mxu0 %v1251_v3 }
 0x4bf   : > { %2769 = vmatprep.mubr.f32.mxu0 %v1252_v14 }
 0x4c2   : > { %2770 = vmatmul.mubr.f32.gmra.mrb[24].mxu0 %v1253_v19  ;;  %v514_v19 = vadd.f32 %v3296_v8, %v353_v16 }
 0x4c3   : > { %2772 = vmatprep.mubr.f32.mxu0 %v1254_v20 }
 0x4c4   : > { %v572_v20 = vrot.slane %v514_v19, 4 }
 0x4c6   : > { %2773 = vmatmul.mubr.f32.gmra.mrb[26].mxu0 %v1255_v58  ;;  %v573_v21 = vmax.f32 %v514_v19, %v572_v20  ;;  %v578_v58 = vrot.slane %v519_v24, 4 }
 0x4c7   : > { %2775 = vmatprep.mubr.f32.mxu0 %v1256_v5 }
 0x4c8   : > { %v574_v22 = vrot.slane %v573_v21, 2 }
 0x4ca   : > { %2776 = vmatmul.mubr.f32.gmra.mrb[28].mxu0 %v1257_v26  ;;  %v575_v25 = vmax.f32 %v573_v21, %v574_v22 }
 0x4cb   : > { %2778 = vmatprep.mubr.f32.mxu0 %v1258_v52  ;;  %v579_v52 = vmax.f32 %v519_v24, %v578_v58 }
 0x4cc   : > { %v576_v26 = vrot.slane %v575_v25, 1 }
 0x4cd   : > { %v580_v29 = vrot.slane %v579_v52, 2 }
 0x4ce   : > { %2779 = vmatmul.mubr.f32.gmra.mrb[30].mxu0 %v1259_v36  ;;  %v577_v28 = vmax.f32 %v575_v25, %v576_v26  ;;  %v363_v36 = vpop.permute.xlu1 %362 }
 0x4cf   : > { %2781 = vmatprep.mubr.f32.mxu0 %v1260_v38  ;;  %v581_v39 = vmax.f32 %v579_v52, %v580_v29  ;;  %v524_v17 = vadd.f32 %v3300_v11, %v363_v36  ;;  %v2232_v11 = vld [vmem:[%s3734_s3 + $0x10] sm:$0xff] }
 0x4d0   : > { %v596_v33 = vsub.f32 %v514_v19, %v577_v28 }
 0x4d1   : > { %v582_v38 = vrot.slane %v581_v39, 1  ;;  %v584_v8 = vrot.slane %v524_v17, 4 }
 0x4d2   : > { %2782 = vmatmul.mubr.f32.gmra.mrb[32].mxu0 %v1261_v35  ;;  %v600_v40 = vmul.f32 1.442695, %v596_v33 }
 0x4d3   : > { %2784 = vmatprep.mubr.f32.mxu0 %v1262_v46  ;;  %v583_v18 = vmax.f32 %v581_v39, %v582_v38  ;;  %v585_v43 = vmax.f32 %v524_v17, %v584_v8 }
 0x4d4   : > { %3006 = vpow2.f32 %v600_v40 }
 0x4d5   : > { %v597_v10 = vsub.f32 %v519_v24, %v583_v18  ;;  %v586_v35 = vrot.slane %v585_v43, 2 }
 0x4d6   : > { %2785 = vmatmul.mubr.f32.gmra.mrb[34].mxu0 %v1263_v47  ;;  %v529_v47 = vadd.f32 %v3298_v9, %v368_v7 }
 0x4d7   : > { %v602_v32 = vmul.f32 1.442695, %v597_v10 }
 0x4d9   : > { %3008 = vpow2.f32 %v602_v32 }
 0x4de   : > { %v3007_v46 = vpop.eup %3006 }
 0x56d   : > { %v2741_v31 = vpop.f32.mrb[4].mxu0 }
 0x56e   : > { %v1330_v37 = vpop.f32.mrb[5].mxu0 }
 0x56f   : > { %2789 = vmatprep.mubr.msk.f32.mxu0 %vm766_vm1, %v1330_v37  ;;  %v608_v37 = vrot.slane %v3007_v46, 4 }
 0x570   : > { %2790 = vmatmul.mubr.msk.f32.vlgmr.msra.gmra.mrb[36].mxu0 %vm766_vm1, %v2741_v31  ;;  %v587_v31 = vmax.f32 %v585_v43, %v586_v35 }
 0x571   : > { %v2744_v44 = vpop.f32.mrb[6].mxu0 }
 0x572   : > { %v1340_v41 = vpop.f32.mrb[7].mxu0 }
 0x573   : > { %2792 = vmatprep.mubr.msk.f32.mxu0 %vm766_vm1, %v1340_v41  ;;  %v590_v41 = vrot.slane %v529_v47, 4 }
 0x574   : > { %2793 = vmatmul.mubr.msk.f32.gmra.mrb[38].mxu0 %vm766_vm1, %v2744_v44  ;;  %v2230_v44 = vld [vmem:[%s3734_s3] sm:$0xff] }
 0x575   : > { %v2747_v48 = vpop.f32.mrb[8].mxu0  ;;  %2845 = vmatprep.mubr.msk.f32.mxu0 %vm410_vm0, %v2230_v44 }
 0x576   : > { %v1350_v49 = vpop.f32.mrb[9].mxu0 }
 0x577   : > { %2795 = vmatprep.mubr.msk.f32.mxu1 %vm766_vm1, %v1350_v49  ;;  %v609_v49 = vadd.f32 %v3007_v46, %v608_v37 }
 0x578   : > { %2796 = vmatmul.mubr.msk.f32.vlgmr.msra.gmra.mrb[16].mxu1 %vm766_vm1, %v2747_v48  ;;  %v588_v48 = vrot.slane %v587_v31, 1 }
 0x579   : > { %v2750_v45 = vpop.f32.mrb[10].mxu0 }
 0x57a   : > { %v1360_v50 = vpop.f32.mrb[11].mxu0  ;;  %v589_v9 = vmax.f32 %v587_v31, %v588_v48 }
 0x57b   : > { %2798 = vmatprep.mubr.msk.f32.mxu1 %vm766_vm1, %v1360_v50  ;;  %v610_v50 = vrot.slane %v609_v49, 2 }
 0x57c   : > { %2799 = vmatmul.mubr.msk.f32.gmra.mrb[18].mxu1 %vm766_vm1, %v2750_v45  ;;  %v591_v45 = vmax.f32 %v529_v47, %v590_v41 }
 0x57d   : > { %v2753_v51 = vpop.f32.mrb[12].mxu0 }
 0x57e   : > { %v1370_v42 = vpop.f32.mrb[13].mxu0 }
 0x57f   : > { %2801 = vmatprep.mubr.msk.f32.mxu1 %vm766_vm1, %v1370_v42  ;;  %v598_v42 = vsub.f32 %v524_v17, %v589_v9 }
 0x580   : > { %2802 = vmatmul.mubr.msk.f32.gmra.mrb[20].mxu1 %vm766_vm1, %v2753_v51  ;;  %v592_v51 = vrot.slane %v591_v45, 2 }
 0x581   : > { %v2756_v53 = vpop.f32.mrb[14].mxu0 }
 0x582   : > { %v1380_v54 = vpop.f32.mrb[15].mxu0 }
 0x583   : > { %2804 = vmatprep.mubr.msk.f32.mxu1 %vm766_vm1, %v1380_v54  ;;  %v3009_v54 = vpop.eup %3008 }
 0x584   : > { %2805 = vmatmul.mubr.msk.f32.gmra.mrb[22].mxu1 %vm766_vm1, %v2756_v53  ;;  %v611_v53 = vadd.f32 %v610_v50, %v609_v49 }
 0x585   : > { %v2759_v55 = vpop.f32.mrb[16].mxu0 }
 0x586   : > { %v1390_v56 = vpop.f32.mrb[17].mxu0 }
 0x587   : > { %2807 = vmatprep.mubr.msk.f32.mxu1 %vm766_vm1, %v1390_v56  ;;  %v604_v56 = vmul.f32 1.442695, %v598_v42 }
 0x588   : > { %2808 = vmatmul.mubr.msk.f32.gmra.mrb[24].mxu1 %vm766_vm1, %v2759_v55  ;;  %v593_v55 = vmax.f32 %v591_v45, %v592_v51 }
 0x589   : > { %v2762_v57 = vpop.f32.mrb[18].mxu0  ;;  %3010 = vpow2.f32 %v604_v56 }
 0x58a   : > { %v1400_v59 = vpop.f32.mrb[19].mxu0 }
 0x58b   : > { %2810 = vmatprep.mubr.msk.f32.mxu1 %vm766_vm1, %v1400_v59  ;;  %v614_v59 = vrot.slane %v3009_v54, 4 }
 0x58c   : > { %2811 = vmatmul.mubr.msk.f32.gmra.mrb[26].mxu1 %vm766_vm1, %v2762_v57  ;;  %v612_v57 = vrot.slane %v611_v53, 1 }
 0x58d   : > { %v2765_v60 = vpop.f32.mrb[20].mxu0 }
 0x58e   : > { %v1410_v61 = vpop.f32.mrb[21].mxu0 }
 0x58f   : > { %2813 = vmatprep.mubr.msk.f32.mxu1 %vm766_vm1, %v1410_v61  ;;  %v613_v61 = vadd.f32 %v612_v57, %v611_v53 }
 0x590   : > { %2814 = vmatmul.mubr.msk.f32.gmra.mrb[28].mxu1 %vm766_vm1, %v2765_v60  ;;  %v594_v60 = vrot.slane %v593_v55, 1 }
 0x591   : > { %v2768_v63 = vpop.f32.mrb[22].mxu0  ;;  %3012 = vrcp.f32 %v613_v61 }
 0x592   : > { %v1420_v1 = vpop.f32.mrb[23].mxu0 }
 0x593   : > { %2816 = vmatprep.mubr.msk.f32.mxu1 %vm766_vm1, %v1420_v1  ;;  %v595_v1 = vmax.f32 %v593_v55, %v594_v60 }
 0x594   : > { %2817 = vmatmul.mubr.msk.f32.gmra.mrb[30].mxu1 %vm766_vm1, %v2768_v63  ;;  %v615_v63 = vadd.f32 %v3009_v54, %v614_v59 }
 0x595   : > { %v2771_v2 = vpop.f32.mrb[24].mxu0 }
 0x596   : > { %v1430_v5 = vpop.f32.mrb[25].mxu0 }
 0x597   : > { %2819 = vmatprep.mubr.msk.f32.mxu1 %vm766_vm1, %v1430_v5  ;;  %v599_v5 = vsub.f32 %v529_v47, %v595_v1 }
 0x598   : > { %2820 = vmatmul.mubr.msk.f32.gmra.mrb[32].mxu1 %vm766_vm1, %v2771_v2  ;;  %v616_v2 = vrot.slane %v615_v63, 2 }
 0x599   : > { %v2774_v12 = vpop.f32.mrb[26].mxu0 }
 0x59a   : > { %v1440_v4 = vpop.f32.mrb[27].mxu0 }
 0x59b   : > { %2822 = vmatprep.mubr.msk.f32.mxu1 %vm766_vm1, %v1440_v4  ;;  %v3599_v4 = vpop.eup %3010 }
 0x59c   : > { %2823 = vmatmul.mubr.msk.f32.gmra.mrb[34].mxu1 %vm766_vm1, %v2774_v12  ;;  %v617_v12 = vadd.f32 %v616_v2, %v615_v63 }
 0x59d   : > { %v2777_v13 = vpop.f32.mrb[28].mxu0 }
 0x59e   : > { %v1450_v14 = vpop.f32.mrb[29].mxu0 }
 0x59f   : > { %2825 = vmatprep.mubr.msk.f32.mxu1 %vm766_vm1, %v1450_v14  ;;  %v618_v14 = vrot.slane %v617_v12, 1 }
 0x5a0   : > { %2826 = vmatmul.mubr.msk.f32.gmra.mrb[36].mxu1 %vm766_vm1, %v2777_v13  ;;  %v606_v13 = vmul.f32 1.442695, %v599_v5 }
 0x5a1   : > { %v2780_v15 = vpop.f32.mrb[30].mxu0 }
 0x5a2   : > { %v1460_v62 = vpop.f32.mrb[31].mxu0  ;;  %3014 = vpow2.f32 %v606_v13 }
 0x5a3   : > { %2828 = vmatprep.mubr.msk.f32.mxu1 %vm766_vm1, %v1460_v62  ;;  %v3013_v62 = vpop.eup %3012 }
 0x5a4   : > { %2829 = vmatmul.mubr.msk.f32.gmra.mrb[38].mxu1 %vm766_vm1, %v2780_v15  ;;  %v620_v15 = vrot.slane %v3599_v4, 4 }
 0x5a5   : > { %v2783_v0 = vpop.f32.mrb[32].mxu0 }
 0x5a6   : > { %v1470_v34 = vpop.f32.mrb[33].mxu0 }
 0x5a7   : > { %2831 = vmatprep.mubr.msk.f32.mxu1 %vm766_vm1, %v1470_v34  ;;  %v621_v34 = vadd.f32 %v3599_v4, %v620_v15 }
 0x5a8   : > { %2832 = vmatmul.mubr.msk.f32.gmra.mrb[40].mxu1 %vm766_vm1, %v2783_v0  ;;  %v619_v0 = vadd.f32 %v618_v14, %v617_v12 }
 0x5a9   : > { %v2786_v3 = vpop.f32.mrb[34].mxu0 }
 0x5aa   : > { %v1480_v6 = vpop.f32.mrb[35].mxu0  ;;  %3016 = vrcp.f32 %v619_v0 }
 0x5ab   : > { %2834 = vmatprep.mubr.msk.f32.mxu1 %vm766_vm1, %v1480_v6  ;;  %v622_v6 = vrot.slane %v621_v34, 2 }
 0x5ac   : > { %2835 = vmatmul.mubr.msk.f32.gmra.mrb[42].mxu1 %vm766_vm1, %v2786_v3  ;;  %v636_v3 = vmul.f32 0.022097087, %v3013_v62  ;;  %v3603_v20 = vpop.eup %3014 }
 0x5ad   : > { %2848 = vmatprep.mubr.msk.f32.mxu1 %vm410_vm0, %v2232_v11  ;;  %v623_v19 = vadd.f32 %v622_v6, %v621_v34  ;;  %v626_v23 = vrot.slane %v3603_v20, 4 }
 0x5ae   : > { %v640_v16 = vmul.f32 %v3007_v46, %v636_v3 }
 0x5af   : > { %v624_v22 = vrot.slane %v623_v19, 1  ;;  %v627_v52 = vadd.f32 %v3603_v20, %v626_v23 }
 0x5b0   : > { %v1821_v21 = vrot.slane %v640_v16, %v3438_v27  ;;  %v1814_v25 = vcombine.high %v640_v16, %v640_v16 }
 0x5b1   : > { %v625_v26 = vadd.f32 %v624_v22, %v623_v19  ;;  %v628_v39 = vrot.slane %v627_v52, 2 }
 0x5b2   : > { %v1829_v24 = vcombine.high %v1821_v21, %v1821_v21  ;;  %v1828_v29 = vrot.slane %v1814_v25, %v3438_v27  ;;  %v1837_v36 = vrot.slane %v1821_v21, %v3438_v27 }
 0x5b3   : > { %3018 = vrcp.f32 %v625_v26  ;;  %v629_v32 = vadd.f32 %v628_v39, %v627_v52 }
 0x5b4   : > { %v3017_v58 = vpop.eup %3016  ;;  %v1851_v28 = vrot.slane %v1829_v24, %v3438_v27  ;;  %v1830_v38 = vcombine.high %v1828_v29, %v1828_v29  ;;  %v2013_v43 = vrot.slane %v1837_v36, %v3440_v30  ;;  %v1859_v10 = vcombine.high %v1837_v36, %v1837_v36 }
 0x5b5   : > { %v637_v33 = vmul.f32 0.022097087, %v3017_v58  ;;  %v1844_v48 = vrot.slane %v1828_v29, %v3438_v27  ;;  %v630_v50 = vrot.slane %v629_v32, 1 }
 0x5b6   : > { %v2017_v40 = vrot.slane %v1851_v28, %v3440_v30  ;;  %v1861_v17 = vcombine.high %v1851_v28, %v1851_v28  ;;  %v1858_v31 = vrot.slane %v1830_v38, %v3438_v27  ;;  %v2021_v41 = vrot.slane %v1859_v10, %v3440_v30 }
 0x5b7   : > { %v641_v8 = vmul.f32 %v3009_v54, %v637_v33  ;;  %v2029_v59 = vrot.slane %v1844_v48, %v3440_v30  ;;  %v1860_v60 = vcombine.high %v1844_v48, %v1844_v48  ;;  %v631_v5 = vadd.f32 %v630_v50, %v629_v32 }
 0x5b8   : > { %v2025_v47 = vrot.slane %v1861_v17, %v3440_v30  ;;  %v2033_v51 = vrot.slane %v1858_v31, %v3440_v30  ;;  %v1862_v42 = vcombine.high %v1858_v31, %v1858_v31 }
 0x5b9   : > { %v1870_v37 = vrot.slane %v641_v8, %v3438_v27  ;;  %v1863_v54 = vcombine.high %v641_v8, %v641_v8  ;;  %v2037_v34 = vrot.slane %v1860_v60, %v3440_v30  ;;  %3020 = vrcp.f32 %v631_v5 }
 0x5ba   : > { %v2041_v12 = vrot.slane %v1862_v42, %v3440_v30 }
 0x5bb   : > { %v1878_v53 = vcombine.high %v1870_v37, %v1870_v37  ;;  %v1877_v14 = vrot.slane %v1863_v54, %v3438_v27  ;;  %v1886_v3 = vrot.slane %v1870_v37, %v3438_v27 }
 0x5bd   : > { %v3019_v55 = vpop.eup %3018  ;;  %v1900_v13 = vrot.slane %v1878_v53, %v3438_v27  ;;  %v1879_v24 = vcombine.high %v1877_v14, %v1877_v14  ;;  %v2045_v52 = vrot.slane %v1886_v3, %v3440_v30  ;;  %v1908_v28 = vcombine.high %v1886_v3, %v1886_v3 }
 0x5be   : > { %v638_v15 = vmul.f32 0.022097087, %v3019_v55 }
 0x5bf   : > { %v2049_v22 = vrot.slane %v1900_v13, %v3440_v30  ;;  %v1910_v23 = vcombine.high %v1900_v13, %v1900_v13  ;;  %v1907_v17 = vrot.slane %v1879_v24, %v3438_v27 }
 0x5c0   : > { %v642_v25 = vmul.f32 %v3599_v4, %v638_v15  ;;  %v1893_v4 = vrot.slane %v1877_v14, %v3438_v27 }
 0x5c1   : > { %v1911_v32 = vcombine.high %v1907_v17, %v1907_v17 }
 0x5c2   : > { %v1919_v38 = vrot.slane %v642_v25, %v3438_v27  ;;  %v1912_v31 = vcombine.high %v642_v25, %v642_v25  ;;  %v1909_v48 = vcombine.high %v1893_v4, %v1893_v4 }
 0x5c3   : > { %v3021_v37 = vpop.eup %3020 }
 0x5c4   : > { %v1926_v53 = vrot.slane %v1912_v31, %v3438_v27  ;;  %v639_v54 = vmul.f32 0.022097087, %v3021_v37 }
 0x5c6   : > { %v643_v13 = vmul.f32 %v3603_v20, %v639_v54 }
 0x643   : > { %v2791_v18 = vpop.f32.mrb[36].mxu0 }
 0x644   : > { %v2171_v35 = vmul.f32 %v2791_v18, %v2017_v40  ;;  %v1651_v7 = vpop.f32.mrb[37].mxu0  ;;  %v2057_v40 = vrot.slane %v1910_v23, %v3440_v30 }
 0x645   : > { %v2170_v46 = vmul.f32 %v2013_v43, %v1651_v7  ;;  %v2053_v43 = vrot.slane %v1908_v28, %v3440_v30 }
 0x647   : > { %v2202_v44 = vadd.f32 %v2171_v35, %v2170_v46  ;;  %v2794_v11 = vpop.f32.mrb[38].mxu0  ;;  %v2065_v46 = vrot.slane %v1907_v17, %v3440_v30 }
 0x648   : > { %v2173_v49 = vmul.f32 %v2794_v11, %v2025_v47  ;;  %v1661_v45 = vpop.f32.mrb[39].mxu0  ;;  %v1927_v47 = vcombine.high %v1919_v38, %v1919_v38 }
 0x649   : > { %v2172_v9 = vmul.f32 %v2021_v41, %v1661_v45  ;;  %v2061_v41 = vrot.slane %v1893_v4, %v3440_v30 }
 0x64a   : > { %v1949_v42 = vrot.slane %v1927_v47, %v3438_v27 }
 0x64b   : > { %v2203_v56 = vadd.f32 %v2202_v44, %v2172_v9  ;;  %v2797_v57 = vpop.f32.mrb[16].mxu1 }
 0x64c   : > { %v2175_v61 = vmul.f32 %v2797_v57, %v2033_v51  ;;  %v1671_v63 = vpop.f32.mrb[17].mxu1  ;;  %v2073_v51 = vrot.slane %v1911_v32, %v3440_v30  ;;  %v2069_v57 = vrot.slane %v1909_v48, %v3440_v30  ;;  %v1959_v5 = vcombine.high %v1949_v42, %v1949_v42 }
 0x64d   : > { %v2174_v1 = vmul.f32 %v2029_v59, %v1671_v63  ;;  %v2204_v2 = vadd.f32 %v2203_v56, %v2173_v49  ;;  %v1935_v59 = vrot.slane %v1919_v38, %v3438_v27 }
 0x64f   : > { %v2205_v62 = vadd.f32 %v2204_v2, %v2174_v1  ;;  %v2800_v0 = vpop.f32.mrb[18].mxu1  ;;  %v2081_v2 = vrot.slane %v1949_v42, %v3440_v30 }
 0x650   : > { %v2177_v6 = vmul.f32 %v2800_v0, %v2041_v12  ;;  %v1681_v16 = vpop.f32.mrb[19].mxu1  ;;  %v1928_v12 = vcombine.high %v1926_v53, %v1926_v53  ;;  %v1957_v0 = vcombine.high %v1935_v59, %v1935_v59 }
 0x651   : > { %v2176_v19 = vmul.f32 %v2037_v34, %v1681_v16  ;;  %v2206_v21 = vadd.f32 %v2205_v62, %v2175_v61  ;;  %v2077_v62 = vrot.slane %v1935_v59, %v3440_v30 }
 0x652   : > { %v2085_v20 = vrot.slane %v1957_v0, %v3440_v30 }
 0x653   : > { %v2207_v58 = vadd.f32 %v2206_v21, %v2176_v19  ;;  %v2803_v26 = vpop.f32.mrb[20].mxu1  ;;  %v2089_v19 = vrot.slane %v1959_v5, %v3440_v30  ;;  %v1956_v21 = vrot.slane %v1928_v12, %v3438_v27 }
 0x654   : > { %v2179_v29 = vmul.f32 %v2803_v26, %v2049_v22  ;;  %v1691_v33 = vpop.f32.mrb[21].mxu1  ;;  %v1968_v22 = vrot.slane %v643_v13, %v3438_v27 }
 0x655   : > { %v2208_v36 = vadd.f32 %v2207_v58, %v2177_v6  ;;  %v2178_v39 = vmul.f32 %v2045_v52, %v1691_v33  ;;  %v1942_v58 = vrot.slane %v1926_v53, %v3438_v27  ;;  %v2097_v33 = vrot.slane %v1956_v21, %v3440_v30 }
 0x656   : > { %v1984_v37 = vrot.slane %v1968_v22, %v3438_v27 }
 0x657   : > { %v2209_v8 = vadd.f32 %v2179_v29, %v2178_v39  ;;  %v2806_v18 = vpop.f32.mrb[22].mxu1  ;;  %v1961_v29 = vcombine.high %v643_v13, %v643_v13  ;;  %v1960_v39 = vcombine.high %v1956_v21, %v1956_v21  ;;  %v2093_v38 = vrot.slane %v1942_v58, %v3440_v30 }
 0x658   : > { %v2181_v10 = vmul.f32 %v2806_v18, %v2057_v40  ;;  %v1701_v35 = vpop.f32.mrb[23].mxu1  ;;  %v1976_v40 = vcombine.high %v1968_v22, %v1968_v22  ;;  %v2109_v42 = vrot.slane %v1984_v37, %v3440_v30  ;;  %v2006_v53 = vcombine.high %v1984_v37, %v1984_v37  ;;  %v3024_v37 = vld [vmem:[%s3188_s17] sm:$0xff] }
 0x659   : > { %v2180_v7 = vmul.f32 %v2053_v43, %v1701_v35  ;;  %v2105_v35 = vrot.slane %v1960_v39, %v3440_v30  ;;  %v2246_v39 = vpop.permute.xlu0 %2245 }
 0x65b   : > { %v2210_v44 = vadd.f32 %v2209_v8, %v2180_v7  ;;  %v2809_v11 = vpop.f32.mrb[24].mxu1  ;;  %v1958_v8 = vcombine.high %v1942_v58, %v1942_v58  ;;  %v1998_v7 = vrot.slane %v1976_v40, %v3438_v27  ;;  %v2241_v40 = vpop.permute.xlu1 %2240 }
 0x65c   : > { %v2183_v49 = vmul.f32 %v2809_v11, %v2065_v46  ;;  %v1711_v45 = vpop.f32.mrb[25].mxu1  ;;  %v1975_v46 = vrot.slane %v1961_v29, %v3438_v27 }
 0x65d   : > { %v2182_v9 = vmul.f32 %v2061_v41, %v1711_v45  ;;  %v2211_v50 = vadd.f32 %v2210_v44, %v2181_v10  ;;  %v2101_v31 = vrot.slane %v1958_v8, %v3440_v30  ;;  %v2008_v45 = vcombine.high %v1998_v7, %v1998_v7 }
 0x65f   : > { %v2212_v55 = vadd.f32 %v2211_v50, %v2182_v9  ;;  %v2812_v56 = vpop.f32.mrb[26].mxu1  ;;  %v1977_v9 = vcombine.high %v1975_v46, %v1975_v46  ;;  %v2121_v59 = vrot.slane %v2008_v45, %v3440_v30 }
 0x660   : > { %v2185_v60 = vmul.f32 %v2812_v56, %v2073_v51  ;;  %v1721_v61 = vpop.f32.mrb[27].mxu1 }
 0x661   : > { %v2184_v63 = vmul.f32 %v2069_v57, %v1721_v61  ;;  %v2213_v1 = vadd.f32 %v2212_v55, %v2183_v49  ;;  %v2113_v49 = vrot.slane %v1998_v7, %v3440_v30 }
 0x663   : > { %v2214_v14 = vadd.f32 %v2213_v1, %v2184_v63  ;;  %v2815_v15 = vpop.f32.mrb[28].mxu1  ;;  %v2117_v1 = vrot.slane %v2006_v53, %v3440_v30 }
 0x664   : > { %v2187_v34 = vmul.f32 %v2815_v15, %v2081_v2  ;;  %v1731_v3 = vpop.f32.mrb[29].mxu1  ;;  %v1991_v2 = vrot.slane %v1975_v46, %v3438_v27  ;;  %v3022_v46 = vld [vmem:[%s3188_s17 + $0x8] sm:$0xff] }
 0x665   : > { %v2215_v6 = vadd.f32 %v2214_v14, %v2185_v60  ;;  %v2186_v16 = vmul.f32 %v2077_v62, %v1731_v3  ;;  %v2005_v60 = vrot.slane %v1977_v9, %v3438_v27 }
 0x666   : > { %v2007_v3 = vcombine.high %v1991_v2, %v1991_v2 }
 0x667   : > { %v2923_v23 = vpack.c.bf16 %v2215_v6, %v2208_v36  ;;  %v2216_v24 = vadd.f32 %v2187_v34, %v2186_v16  ;;  %v2818_v25 = vpop.f32.mrb[30].mxu1  ;;  %v2129_v14 = vrot.slane %v2005_v60, %v3440_v30  ;;  %v2009_v15 = vcombine.high %v2005_v60, %v2005_v60 }
 0x668   : > { %v2189_v26 = vmul.f32 %v2818_v25, %v2089_v19  ;;  %v1741_v52 = vpop.f32.mrb[31].mxu1  ;;  %v2125_v34 = vrot.slane %v1991_v2, %v3440_v30  ;;  %v2133_v27 = vrot.slane %v2007_v3, %v3440_v30 }
 0x669   : > { %v2188_v28 = vmul.f32 %v2085_v20, %v1741_v52  ;;  %2924 = vmatprep.subr.bf16.mxu0 %v2923_v23  ;;  %2933 = vmatprep.subr.bf16.mxu1 %v2923_v23  ;;  %v2137_v22 = vrot.slane %v2009_v15, %v3440_v30  ;;  %v2233_v30 = vld [vmem:[%s3734_s3 + $0x18] sm:$0xff] }
 0x66a   : > { %2926 = vmatpush3.bf16.msra.mxu0 %v2923_v23  ;;  %2935 = vmatpush3.bf16.msra.mxu1 %v2923_v23 }
 0x66b   : > { %v2217_v17 = vadd.f32 %v2216_v24, %v2188_v28  ;;  %v2821_v36 = vpop.f32.mrb[32].mxu1 }
 0x66c   : > { %v2191_v18 = vmul.f32 %v2821_v36, %v2097_v33  ;;  %v1751_v43 = vpop.f32.mrb[33].mxu1  ;;  %v2231_v33 = vld [vmem:[%s3734_s3 + $0x8] sm:$0xff]  ;;  %v2251_v36 = vpop.permute.xlu1 %2250 }
 0x66d   : > { %v2190_v4 = vmul.f32 %v2093_v38, %v1751_v43  ;;  %v2218_v10 = vadd.f32 %v2217_v17, %v2189_v26  ;;  %v2256_v17 = vpop.permute.xlu0 %2255 }
 0x66f   : > { %v2219_v32 = vadd.f32 %v2218_v10, %v2190_v4  ;;  %v2824_v47 = vpop.f32.mrb[34].mxu1 }
 0x670   : > { %v2193_v44 = vmul.f32 %v2824_v47, %v2105_v35  ;;  %v1761_v11 = vpop.f32.mrb[35].mxu1  ;;  %v3023_v47 = vld [vmem:[%s3188_s17 + $0x18] sm:$0xff] }
 0x671   : > { %v2192_v41 = vmul.f32 %v2101_v31, %v1761_v11  ;;  %v2220_v48 = vadd.f32 %v2219_v32, %v2191_v18  ;;  %v3025_v11 = vld [vmem:[%s3188_s17 + $0x10] sm:$0xff] }
 0x673   : > { %v2221_v50 = vadd.f32 %v2220_v48, %v2192_v41  ;;  %v2827_v51 = vpop.f32.mrb[36].mxu1 }
 0x674   : > { %v2195_v54 = vmul.f32 %v2827_v51, %v2113_v49  ;;  %v1771_v55 = vpop.f32.mrb[37].mxu1 }
 0x675   : > { %v2222_v56 = vadd.f32 %v2221_v50, %v2193_v44  ;;  %v2194_v57 = vmul.f32 %v2109_v42, %v1771_v55 }
 0x677   : > { %v2223_v61 = vadd.f32 %v2195_v54, %v2194_v57  ;;  %v2830_v63 = vpop.f32.mrb[38].mxu1 }
 0x678   : > { %v2197_v5 = vmul.f32 %v2830_v63, %v2121_v59  ;;  %v1781_v12 = vpop.f32.mrb[39].mxu1 }
 0x679   : > { %v2196_v13 = vmul.f32 %v2117_v1, %v1781_v12 }
 0x67b   : > { %v2224_v62 = vadd.f32 %v2223_v61, %v2196_v13  ;;  %v2833_v0 = vpop.f32.mrb[40].mxu1 }
 0x67c   : > { %v2199_v6 = vmul.f32 %v2833_v0, %v2129_v14  ;;  %v1791_v16 = vpop.f32.mrb[41].mxu1 }
 0x67d   : > { %v2198_v19 = vmul.f32 %v2125_v34, %v1791_v16  ;;  %v2225_v21 = vadd.f32 %v2224_v62, %v2197_v5 }
 0x67f   : > { %v2226_v23 = vadd.f32 %v2225_v21, %v2198_v19  ;;  %v2836_v24 = vpop.f32.mrb[42].mxu1 }
 0x680   : > { %v2201_v25 = vmul.f32 %v2836_v24, %v2137_v22  ;;  %v1801_v20 = vpop.f32.mrb[43].mxu1 }
 0x681   : > { %v2200_v58 = vmul.f32 %v2133_v27, %v1801_v20  ;;  %v2227_v26 = vadd.f32 %v2226_v23, %v2199_v6 }
 0x683   : > { %v2228_v52 = vadd.f32 %v2227_v26, %v2200_v58 }
 0x685   : > { %v2229_v28 = vadd.f32 %v2228_v52, %v2201_v25 }
 0x687   : > { %v2927_v29 = vpack.c.bf16 %v2229_v28, %v2222_v56 }
 0x689   : > { %2928 = vmatprep.subr.bf16.mxu0 %v2927_v29  ;;  %2934 = vmatprep.subr.bf16.mxu1 %v2927_v29 }
 0x68a   : > { %2930 = vmatpush3.bf16.msra.mxu0 %v2927_v29  ;;  %2936 = vmatpush3.bf16.msra.mxu1 %v2927_v29 }
 0x68d   : > { %2846 = vmatmul.mubr.msk.f32.vlgmr.msra.gmra.mrb[40].mxu0 %vm410_vm0, %v2231_v33  ;;  %2849 = vmatmul.mubr.msk.f32.vlgmr.msra.gmra.mrb[44].mxu1 %vm410_vm0, %v2233_v30 }
 0x760   : > { %v2847_v38 = vpop.f32.mrb[40].mxu0  ;;  %v2850_v8 = vpop.f32.mrb[44].mxu1 }
 0x761   : > { %v2342_v18 = vadd.f32 %v2847_v38, %v2246_v39  ;;  %v2352_v43 = vadd.f32 %v2850_v8, %v2256_v17  ;;  %v2336_v4 = vpop.f32.mrb[41].mxu0  ;;  %v2346_v10 = vpop.f32.mrb[45].mxu1 }
 0x762   : > { %v2337_v35 = vadd.f32 %v2336_v4, %v2241_v40  ;;  %v2347_v7 = vadd.f32 %v2346_v10, %v2251_v36 }
 0x763   : > { %v2356_v32 = vadd.f32 %v3022_v46, %v2342_v18  ;;  %v2358_v31 = vadd.f32 %v3023_v47, %v2352_v43 }
 0x764   : > { %v2355_v44 = vadd.f32 %v3024_v37, %v2337_v35  ;;  %v2357_v41 = vadd.f32 %v3025_v11, %v2347_v7 }
 0x765   : > { %2360 = vst [vmem:[%s271_s13 + $0x8] sm:$0xff] %v2356_v32  ;;  %2362 = vst [vmem:[%s271_s13 + $0x18] sm:$0xff] %v2358_v31 }
 0x766   : > { %2359 = vst [vmem:[%s271_s13] sm:$0xff] %v2355_v44  ;;  %2361 = vst [vmem:[%s271_s13 + $0x10] sm:$0xff] %v2357_v41 }
 0x767   : > { %3039 = shalt.err (!%p3036_p3)
}
 0x768   : > { %s3040_s17 = scalar_lea.hbm %s3684_s28, 512  ;;  %s3044_s9 = scalar_lea.hbm %s3738_s7, 1024 }
 0x769   : > { %p3041_p4 = scmp.ne.s32.totalorder %s3684_s28, %s3040_s17  ;;  %p3045_p9 = scmp.lt.u32.totalorder %s3684_s28, %s3738_s7 }
 0x76a   : > { %p3046_p10 = scmp.lt.u32.totalorder %s3044_s9, %s3040_s17  ;;  %p3048_p12 = scmp.lt.u32.totalorder %s3040_s17, %s3684_s28 }
 0x76b   : > { %p3042_p7 = pnand %p3041_p4, %p3173_p5 }
 0x76c   : > { %p3047_p11 = por %p3046_p10, %p3045_p9 }
 0x76d   : > { %p3043_p8 = pneg %p3042_p7 }
 0x76e   : > { %p3049_p13 = por %p3048_p12, %p3047_p11 }
 0x770   : > { %p3050_p0 = pnand %p3049_p13, %p3043_p8 }
 0x772   : > { %3053 = shalt.err (!%p3050_p0)
}
 0x773   : > { %s3093_s16 = smov 128   ;;  %s3094_s18 = smov 8  }
 0x774   : > { %2937 = dma.vmem_to_hbm [thread:$0]  (%p3173_p5), %s3678_s14, 512, %s3684_s28, %s3690_s19, %s3093_s16, %s3093_s16, %s3094_s18  }
 0x775 PF: > { %p2943_p1 = scmp.ge.s32.totalorder %s3088_s27, 2  ;;  %s2392_s20 = sand.u32 1, %s3076_s24  }
 0x776   : > { %s2393_s21 = scalar_lea.sflag [#allocation3], %s2392_s20 }
 0x777   : > { %p2940_p2 = pnand %p2943_p1, %p3177_p6 }
 0x779   : > { %3071 = dma.done.wait (!%p2940_p2), %s2393_s21, 512  }
 0x77a   : > { %3073 = vsyncadd (!%p2940_p2), %s2393_s21, 4294966784  ;;  %p17_p3 = scmp.ge.s32.totalorder %s3160_s30, 4   ;;  %s3741_s24 = smov %s3080_s25 }
 0x77b   : > { %s3742_s25 = smov %s3084_s26  ;;  %s3743_s26 = smov %s3171_s10 }
 0x77c   : > { %s3744_s27 = smov %s3160_s30  ;;  %19 = sbr.rel (!%p17_p3) target bundleno = 3 (0x3), region = 83 }
 0x783   :  { %2398 = vsyncpa [#allocation3], 1 }
 0x784   :  { %2400 = vsyncpa [#allocation3 + $0x1], 1 }

</bundles_post_ra>
